<compile_context>
chip_gen: v7x
topology: tpu7x:2x2x1
jax: 0.10.0
libtpu: 0.0.40
codegen_flags: <defaults>
</compile_context>

<pallas_src>
import functools

import jax
import jax.numpy as jnp
from jax.experimental import pallas as pl
from jax.experimental.pallas import tpu as pltpu


_VMEM_LIMIT = 32 * 1024 * 1024
_CP_ROWS = pltpu.CompilerParams(dimension_semantics=("parallel",),
                                vmem_limit_bytes=_VMEM_LIMIT)


# ---------------------------- Pallas kernels ----------------------------

def _mm_bn_relu_kernel(a_ref, w_ref, s_ref, b_ref, o_ref):
    """o = relu((a @ w) * s + b)   -- conv0 + norm0 + relu."""
    y = jnp.dot(a_ref[...], w_ref[...], preferred_element_type=jnp.float32)
    o_ref[...] = jnp.maximum(y * s_ref[...] + b_ref[...], 0.0)


def _max4_kernel(a_ref, b_ref, c_ref, d_ref, o_ref):
    """2x2 max pool over the 4 shifted views."""
    o_ref[...] = jnp.maximum(jnp.maximum(a_ref[...], b_ref[...]),
                             jnp.maximum(c_ref[...], d_ref[...]))


def _bn_relu_mm_bn_relu_kernel(x_ref, s1_ref, b1_ref, w_ref, s2_ref, b2_ref, o_ref):
    """o = relu((relu(x*s1+b1) @ w) * s2 + b2)  -- norm1+relu+conv1+norm2+relu."""
    h = jnp.maximum(x_ref[...] * s1_ref[...] + b1_ref[...], 0.0)
    y = jnp.dot(h.astype(jnp.bfloat16), w_ref[...],
                preferred_element_type=jnp.float32)
    o_ref[...] = jnp.maximum(y * s2_ref[...] + b2_ref[...], 0.0)


def _bn_relu_mm_kernel(x_ref, s_ref, b_ref, w_ref, o_ref):
    """o = relu(x*s+b) @ w   -- trans2 (no pooling)."""
    h = jnp.maximum(x_ref[...] * s_ref[...] + b_ref[...], 0.0)
    o_ref[...] = jnp.dot(h.astype(jnp.bfloat16), w_ref[...],
                         preferred_element_type=jnp.float32)


def _bn_relu_avg4_mm_kernel(a_ref, b_ref, c_ref, d_ref, s_ref, t_ref, w_ref, o_ref):
    """Transition: o = avgpool2x2(relu(x*s+t)) @ w (pool before the 1x1 conv)."""
    s = s_ref[...]
    t = t_ref[...]
    r = (jnp.maximum(a_ref[...] * s + t, 0.0) +
         jnp.maximum(b_ref[...] * s + t, 0.0) +
         jnp.maximum(c_ref[...] * s + t, 0.0) +
         jnp.maximum(d_ref[...] * s + t, 0.0)) * 0.25
    o_ref[...] = jnp.dot(r.astype(jnp.bfloat16), w_ref[...],
                         preferred_element_type=jnp.float32)


def _make_conv3x3_kernel(hh, ww):
    """3x3, stride 1, pad 1 conv on a per-image flattened padded activation.

    Input block x: (1, (hh+3)*(ww+2), Cin)  = zero-padded image, flattened rows.
    Weight w:      (9, Cin, Cout)           = taps in (ky, kx) order.
    Output block:  (1, hh*(ww+2), Cout)     = extended rows; cols >= ww are
                                              garbage and sliced off outside.
    A tap (ky, kx) is a constant flat row shift of ky*(ww+2)+kx; the 9 shifted
    matmuls are accumulated in f32 in VMEM (no im2col materialization).
    """
    wp = ww + 2
    m2 = hh * wp
    shifts = [ky * wp + kx for ky in range(3) for kx in range(3)]

    def kernel(x_ref, w_ref, o_ref):
        cout = w_ref.shape[-1]
        acc = jnp.zeros((m2, cout), jnp.float32)
        for t, sh in enumerate(shifts):
            patch = x_ref[0, sh:sh + m2, :]
            acc = acc + jnp.dot(patch, w_ref[t],
                                preferred_element_type=jnp.float32)
        o_ref[0] = acc

    return kernel


# ---------------------------- tiling helpers ----------------------------

def _round_up(x, m):
    return ((x + m - 1) // m) * m


def _tile_rows(m, max_tm=256):
    """Row tile size (multiple of 8, up to max_tm) and padded row count."""
    tm = min(max_tm, _round_up(m, 8))
    mp = _round_up(m, tm)
    return tm, mp


def _pool_views(x_nhwc):
    """4 strided (flattened) views for 2x2/stride-2 pooling (floor semantics)."""
    n, h, w, c = x_nhwc.shape
    ho, wo = h // 2, w // 2
    views = [x_nhwc[:, dy:2 * ho:2, dx:2 * wo:2, :].reshape(-1, c)
             for dy in (0, 1) for dx in (0, 1)]
    return views, n, ho, wo, c


# ---------------------------- op wrappers ----------------------------

def conv0_bn_relu(x_nhwc, w_bf16, scale, bias, stride=2, pad=3):
    """7x7/stride-2 stem conv (im2col, tiny) fused with norm0 + relu."""
    n, h, wd, c = x_nhwc.shape
    kh, kw, _, cout = w_bf16.shape
    xp = jnp.pad(x_nhwc, ((0, 0), (pad, pad), (pad, pad), (0, 0)))
    ho = (h + 2 * pad - kh) // stride + 1
    wo = (wd + 2 * pad - kw) // stride + 1
    cols = [xp[:, dy:dy + stride * ho:stride, dx:dx + stride * wo:stride, :]
            for dy in range(kh) for dx in range(kw)]
    patches = jnp.concatenate(cols, axis=-1).reshape(n * ho * wo, kh * kw * c)
    patches = patches.astype(jnp.bfloat16)
    wmat = w_bf16.reshape(kh * kw * c, cout)

    m, k = patches.shape
    tm, mp = _tile_rows(m)
    if mp != m:
        patches = jnp.pad(patches, ((0, mp - m), (0, 0)))
    out = pl.pallas_call(
        _mm_bn_relu_kernel,
        out_shape=jax.ShapeDtypeStruct((mp, cout), jnp.float32),
        grid=(mp // tm,),
        in_specs=[pl.BlockSpec((tm, k), lambda i: (i, 0)),
                  pl.BlockSpec((k, cout), lambda i: (0, 0)),
                  pl.BlockSpec((1, cout), lambda i: (0, 0)),
                  pl.BlockSpec((1, cout), lambda i: (0, 0))],
        out_specs=pl.BlockSpec((tm, cout), lambda i: (i, 0)),
        compiler_params=_CP_ROWS,
    )(patches, wmat, scale.reshape(1, cout), bias.reshape(1, cout))
    return out[:m].reshape(n, ho, wo, cout)


def maxpool2x2(x_nhwc):
    views, n, ho, wo, c = _pool_views(x_nhwc)
    m = n * ho * wo
    tm, mp = _tile_rows(m)
    if mp != m:
        views = [jnp.pad(v, ((0, mp - m), (0, 0))) for v in views]
    out = pl.pallas_call(
        _max4_kernel,
        out_shape=jax.ShapeDtypeStruct((mp, c), jnp.float32),
        grid=(mp // tm,),
        in_specs=[pl.BlockSpec((tm, c), lambda i: (i, 0))] * 4,
        out_specs=pl.BlockSpec((tm, c), lambda i: (i, 0)),
        compiler_params=_CP_ROWS,
    )(*views)
    return out[:m].reshape(n, ho, wo, c)


def bottleneck_conv1(x2d, s1, b1, w1_bf16, s2, b2):
    """Fused norm1+relu+conv1(1x1)+norm2+relu over flattened rows."""
    m, cin = x2d.shape
    inter = w1_bf16.shape[1]
    tm, mp = _tile_rows(m)
    xp = jnp.pad(x2d, ((0, mp - m), (0, 0))) if mp != m else x2d
    out = pl.pallas_call(
        _bn_relu_mm_bn_relu_kernel,
        out_shape=jax.ShapeDtypeStruct((mp, inter), jnp.float32),
        grid=(mp // tm,),
        in_specs=[pl.BlockSpec((tm, cin), lambda i: (i, 0)),
                  pl.BlockSpec((1, cin), lambda i: (0, 0)),
                  pl.BlockSpec((1, cin), lambda i: (0, 0)),
                  pl.BlockSpec((cin, inter), lambda i: (0, 0)),
                  pl.BlockSpec((1, inter), lambda i: (0, 0)),
                  pl.BlockSpec((1, inter), lambda i: (0, 0))],
        out_specs=pl.BlockSpec((tm, inter), lambda i: (i, 0)),
        compiler_params=_CP_ROWS,
    )(xp, s1.reshape(1, cin), b1.reshape(1, cin), w1_bf16,
      s2.reshape(1, inter), b2.reshape(1, inter))
    return out[:m]


def conv3x3(h_nhwc, w9_bf16):
    """3x3 pad-1 conv of the (already BN+ReLU'd) activation, per image."""
    n, hh, ww, cin = h_nhwc.shape
    cout = w9_bf16.shape[-1]
    wp = ww + 2
    r = (hh + 3) * wp           # 1 top + 2 bottom rows of zero pad keep all
    m2 = hh * wp                # static tap slices in range
    hp = jnp.pad(h_nhwc, ((0, 0), (1, 2), (1, 1), (0, 0)))
    hp = hp.reshape(n, r, cin).astype(jnp.bfloat16)
    out = pl.pallas_call(
        _make_conv3x3_kernel(hh, ww),
        out_shape=jax.ShapeDtypeStruct((n, m2, cout), jnp.float32),
        grid=(n,),
        in_specs=[pl.BlockSpec((1, r, cin), lambda i: (i, 0, 0)),
                  pl.BlockSpec((9, cin, cout), lambda i: (0, 0, 0))],
        out_specs=pl.BlockSpec((1, m2, cout), lambda i: (i, 0, 0)),
        compiler_params=_CP_ROWS,
    )(hp, w9_bf16)
    return out.reshape(n, hh, wp, cout)[:, :, :ww, :]


def transition(x_nhwc, scale, bias, w_bf16):
    """Fused norm+relu+avgpool(2x2)+conv(1x1); exact (avg commutes with 1x1)."""
    views, n, ho, wo, c = _pool_views(x_nhwc)
    cout = w_bf16.shape[1]
    m = n * ho * wo
    tm, mp = _tile_rows(m)
    if mp != m:
        views = [jnp.pad(v, ((0, mp - m), (0, 0))) for v in views]
    out = pl.pallas_call(
        _bn_relu_avg4_mm_kernel,
        out_shape=jax.ShapeDtypeStruct((mp, cout), jnp.float32),
        grid=(mp // tm,),
        in_specs=[pl.BlockSpec((tm, c), lambda i: (i, 0))] * 4 +
                 [pl.BlockSpec((1, c), lambda i: (0, 0)),
                  pl.BlockSpec((1, c), lambda i: (0, 0)),
                  pl.BlockSpec((c, cout), lambda i: (0, 0))],
        out_specs=pl.BlockSpec((tm, cout), lambda i: (i, 0)),
        compiler_params=_CP_ROWS,
    )(*views, scale.reshape(1, c), bias.reshape(1, c), w_bf16)
    return out[:m].reshape(n, ho, wo, cout)


def bn_relu_conv1x1(x2d, scale, bias, w_bf16):
    """Fused norm+relu+conv(1x1)  (trans2 head, no pooling)."""
    m, cin = x2d.shape
    cout = w_bf16.shape[1]
    tm, mp = _tile_rows(m)
    xp = jnp.pad(x2d, ((0, mp - m), (0, 0))) if mp != m else x2d
    out = pl.pallas_call(
        _bn_relu_mm_kernel,
        out_shape=jax.ShapeDtypeStruct((mp, cout), jnp.float32),
        grid=(mp // tm,),
        in_specs=[pl.BlockSpec((tm, cin), lambda i: (i, 0)),
                  pl.BlockSpec((1, cin), lambda i: (0, 0)),
                  pl.BlockSpec((1, cin), lambda i: (0, 0)),
                  pl.BlockSpec((cin, cout), lambda i: (0, 0))],
        out_specs=pl.BlockSpec((tm, cout), lambda i: (i, 0)),
        compiler_params=_CP_ROWS,
    )(xp, scale.reshape(1, cin), bias.reshape(1, cin), w_bf16)
    return out[:m]


# ---------------------------- parameters ----------------------------

def _bn_params(key, c, eps=1e-5):
    k1, k2, k3, k4 = jax.random.split(key, 4)
    gamma = jax.random.uniform(k1, (c,), jnp.float32, 0.5, 1.5)
    beta = jax.random.normal(k2, (c,), jnp.float32) * 0.1
    mean = jax.random.normal(k3, (c,), jnp.float32) * 0.1
    var = jax.random.uniform(k4, (c,), jnp.float32, 0.5, 1.5)
    scale = gamma / jnp.sqrt(var + eps)
    bias = beta - mean * scale
    return scale, bias


def _conv_w(key, kh, kw, cin, cout):
    fan_in = kh * kw * cin
    return jax.random.normal(key, (kh, kw, cin, cout), jnp.float32) / jnp.sqrt(float(fan_in))


def init_deepcnn300(key, input_channel, num_in_features, depth=16, growth_rate=24, num_bn=3):
    keys = iter(jax.random.split(key, 8 * depth + 8))
    p = {}
    p["conv0_w"] = _conv_w(next(keys), 7, 7, input_channel,
                           num_in_features).astype(jnp.bfloat16)
    p["norm0"] = _bn_params(next(keys), num_in_features)

    inter = num_bn * growth_rate

    def make_block(cin):
        blocks = []
        c = cin
        for _ in range(depth):
            blocks.append({
                "norm1": _bn_params(next(keys), c),
                "conv1_w": _conv_w(next(keys), 1, 1, c, inter)[0, 0].astype(jnp.bfloat16),
                "norm2": _bn_params(next(keys), inter),
                "conv2_w": _conv_w(next(keys), 3, 3, inter, growth_rate)
                           .reshape(9, inter, growth_rate).astype(jnp.bfloat16),
            })
            c += growth_rate
        return blocks, c

    p["block1"], c1 = make_block(num_in_features)
    p["trans1"] = {"norm": _bn_params(next(keys), c1),
                   "conv_w": _conv_w(next(keys), 1, 1, c1, c1 // 2)[0, 0].astype(jnp.bfloat16)}
    p["block2"], c2 = make_block(c1 // 2)
    p["trans2"] = {"norm": _bn_params(next(keys), c2),
                   "conv_w": _conv_w(next(keys), 1, 1, c2, c2 // 2)[0, 0].astype(jnp.bfloat16)}
    return p


# ---------------------------- forward ----------------------------

def _bottleneck_forward(x_nhwc, blk):
    n, hh, ww, c = x_nhwc.shape
    s1, b1 = blk["norm1"]
    s2, b2 = blk["norm2"]
    h1 = bottleneck_conv1(x_nhwc.reshape(-1, c), s1, b1, blk["conv1_w"], s2, b2)
    h1 = h1.reshape(n, hh, ww, -1)
    out = conv3x3(h1, blk["conv2_w"])
    # dropout: identity (eval mode)
    # TODO(synk): replace the per-layer concat with a preallocated full-width
    # channel buffer + input_output_aliases to remove O(depth^2) copy traffic.
    return jnp.concatenate([x_nhwc, out], axis=-1)


def _dense_block_forward(x, blocks):
    for blk in blocks:
        x = _bottleneck_forward(x, blk)
    return x


def deepcnn300_forward(params, x_nchw):
    x = jnp.transpose(x_nchw, (0, 2, 3, 1)).astype(jnp.float32)      # NCHW -> NHWC
    s0, b0 = params["norm0"]
    out = conv0_bn_relu(x, params["conv0_w"], s0, b0)                # conv0+norm0+relu
    out = maxpool2x2(out)                                            # 2x2 max pool
    out = _dense_block_forward(out, params["block1"])
    out = transition(out, *params["trans1"]["norm"], params["trans1"]["conv_w"])
    out = _dense_block_forward(out, params["block2"])
    n, h, w, c = out.shape
    s2, b2 = params["trans2"]["norm"]
    out = bn_relu_conv1x1(out.reshape(-1, c), s2, b2, params["trans2"]["conv_w"])
    out = out.reshape(n, h, w, -1)
    return jnp.transpose(out, (0, 3, 1, 2))                          # NHWC -> NCHW


# ---------------------------- main ----------------------------

if __name__ == "__main__":
    key = jax.random.PRNGKey(0)
    kp, kx = jax.random.split(key)

    # Small config consistent with the module's constructor:
    #   DeepCNN300(input_channel=4, num_in_features=16, depth=2, growth_rate=8)
    input_channel, num_in_features, depth, growth_rate = 4, 16, 2, 8
    params = init_deepcnn300(kp, input_channel, num_in_features,
                             depth=depth, growth_rate=growth_rate)

    x = jax.random.normal(kx, (2, input_channel, 16, 16), jnp.float32)  # NCHW like PyTorch

    fwd = jax.jit(deepcnn300_forward)
    out = jax.block_until_ready(fwd(params, x))

    # conv0(s2) -> 8x8 ; maxpool -> 4x4 ; trans1 avgpool -> 2x2 ; channels:
    # 16 -> +2*8=32 -> /2=16 -> +2*8=32 -> /2=16
    assert out.shape == (2, 16, 2, 2), out.shape
    assert bool(jnp.all(jnp.isfinite(out)))
    print("KERNEL_OK")
</pallas_src>

<mosaic_0001>
module attributes {stable_mosaic.version = 11 : i64} {
  func.func @_mm_bn_relu_kernel(%arg0: i32, %arg1: memref<128x196xbf16, #tpu.memory_space<vmem>>, %arg2: memref<196x16xbf16, #tpu.memory_space<vmem>>, %arg3: memref<1x16xf32, #tpu.memory_space<vmem>>, %arg4: memref<1x16xf32, #tpu.memory_space<vmem>>, %arg5: memref<128x16xf32, #tpu.memory_space<vmem>>) attributes {dimension_semantics = [#tpu.dimension_semantics<parallel>], iteration_bounds = array<i64: 1>, scalar_prefetch = 0 : i64, scratch_operands = 0 : i64, tpu.core_type = #tpu.core_type<tc>, window_params = [{transform_indices = @transform_0, window_bounds = array<i64: 128, 196>}, {pipeline_mode = #tpu.pipeline_mode<synchronous>, transform_indices = @transform_1, window_bounds = array<i64: 196, 16>}, {pipeline_mode = #tpu.pipeline_mode<synchronous>, transform_indices = @transform_2, window_bounds = array<i64: 1, 16>}, {pipeline_mode = #tpu.pipeline_mode<synchronous>, transform_indices = @transform_3, window_bounds = array<i64: 1, 16>}, {transform_indices = @transform_4, window_bounds = array<i64: 128, 16>}]} {
    %c0 = arith.constant 0 : index
    %c0_0 = arith.constant 0 : index
    %0 = vector.load %arg1[%c0, %c0_0] : memref<128x196xbf16, #tpu.memory_space<vmem>>, vector<128x196xbf16>
    %c0_1 = arith.constant 0 : index
    %c0_2 = arith.constant 0 : index
    %1 = vector.load %arg2[%c0_1, %c0_2] : memref<196x16xbf16, #tpu.memory_space<vmem>>, vector<196x16xbf16>
    %cst = arith.constant dense<0.000000e+00> : vector<128x16xf32>
    %2 = tpu.matmul %0, %1, %cst {dimension_numbers = #tpu.dot_dimension_numbers<[1], [0], [0], [1], [0, 0, 1, 1], [], []>} : vector<128x196xbf16>, vector<196x16xbf16>, vector<128x16xf32> -> vector<128x16xf32>
    %c0_3 = arith.constant 0 : index
    %c0_4 = arith.constant 0 : index
    %3 = vector.load %arg3[%c0_3, %c0_4] : memref<1x16xf32, #tpu.memory_space<vmem>>, vector<1x16xf32>
    %4 = vector.broadcast %3 : vector<1x16xf32> to vector<128x16xf32>
    %5 = arith.mulf %2, %4 : vector<128x16xf32>
    %c0_5 = arith.constant 0 : index
    %c0_6 = arith.constant 0 : index
    %6 = vector.load %arg4[%c0_5, %c0_6] : memref<1x16xf32, #tpu.memory_space<vmem>>, vector<1x16xf32>
    %7 = vector.broadcast %6 : vector<1x16xf32> to vector<128x16xf32>
    %8 = arith.addf %5, %7 : vector<128x16xf32>
    %cst_7 = arith.constant 0.000000e+00 : f32
    %9 = vector.broadcast %cst_7 : f32 to vector<128x16xf32>
    %10 = arith.maximumf %8, %9 : vector<128x16xf32>
    %c0_8 = arith.constant 0 : index
    %c0_9 = arith.constant 0 : index
    %11 = vector.load %arg5[%c0_8, %c0_9] : memref<128x16xf32, #tpu.memory_space<vmem>>, vector<128x16xf32>
    tpu.vector_store %arg5[%c0_8, %c0_9], %10 {strides = array<i32>} : memref<128x16xf32, #tpu.memory_space<vmem>>, vector<128x16xf32>,
    return
  }
  func.func @transform_0(%arg0: i32) -> (i32, i32) {
    %c0_i32 = arith.constant 0 : i32
    %c0_i32_0 = arith.constant 0 : i32
    return %arg0, %c0_i32 : i32, i32
  }
  func.func @transform_1(%arg0: i32) -> (i32, i32) {
    %c0_i32 = arith.constant 0 : i32
    %c0_i32_0 = arith.constant 0 : i32
    %c0_i32_1 = arith.constant 0 : i32
    return %c0_i32, %c0_i32_0 : i32, i32
  }
  func.func @transform_2(%arg0: i32) -> (i32, i32) {
    %c0_i32 = arith.constant 0 : i32
    %c0_i32_0 = arith.constant 0 : i32
    %c0_i32_1 = arith.constant 0 : i32
    return %c0_i32, %c0_i32_0 : i32, i32
  }
  func.func @transform_3(%arg0: i32) -> (i32, i32) {
    %c0_i32 = arith.constant 0 : i32
    %c0_i32_0 = arith.constant 0 : i32
    %c0_i32_1 = arith.constant 0 : i32
    return %c0_i32, %c0_i32_0 : i32, i32
  }
  func.func @transform_4(%arg0: i32) -> (i32, i32) {
    %c0_i32 = arith.constant 0 : i32
    %c0_i32_0 = arith.constant 0 : i32
    return %arg0, %c0_i32 : i32, i32
  }
}

module attributes {stable_mosaic.version = 11 : i64} {
  func.func @_bn_relu_mm_bn_relu_kernel(%arg0: i32, %arg1: memref<32x16xf32, #tpu.memory_space<vmem>>, %arg2: memref<1x16xf32, #tpu.memory_space<vmem>>, %arg3: memref<1x16xf32, #tpu.memory_space<vmem>>, %arg4: memref<16x24xbf16, #tpu.memory_space<vmem>>, %arg5: memref<1x24xf32, #tpu.memory_space<vmem>>, %arg6: memref<1x24xf32, #tpu.memory_space<vmem>>, %arg7: memref<32x24xf32, #tpu.memory_space<vmem>>) attributes {dimension_semantics = [#tpu.dimension_semantics<parallel>], iteration_bounds = array<i64: 1>, scalar_prefetch = 0 : i64, scratch_operands = 0 : i64, tpu.core_type = #tpu.core_type<tc>, window_params = [{transform_indices = @transform_0, window_bounds = array<i64: 32, 16>}, {pipeline_mode = #tpu.pipeline_mode<synchronous>, transform_indices = @transform_1, window_bounds = array<i64: 1, 16>}, {pipeline_mode = #tpu.pipeline_mode<synchronous>, transform_indices = @transform_2, window_bounds = array<i64: 1, 16>}, {pipeline_mode = #tpu.pipeline_mode<synchronous>, transform_indices = @transform_3, window_bounds = array<i64: 16, 24>}, {pipeline_mode = #tpu.pipeline_mode<synchronous>, transform_indices = @transform_4, window_bounds = array<i64: 1, 24>}, {pipeline_mode = #tpu.pipeline_mode<synchronous>, transform_indices = @transform_5, window_bounds = array<i64: 1, 24>}, {transform_indices = @transform_6, window_bounds = array<i64: 32, 24>}]} {
    %c0 = arith.constant 0 : index
    %c0_0 = arith.constant 0 : index
    %0 = vector.load %arg1[%c0, %c0_0] : memref<32x16xf32, #tpu.memory_space<vmem>>, vector<32x16xf32>
    %c0_1 = arith.constant 0 : index
    %c0_2 = arith.constant 0 : index
    %1 = vector.load %arg2[%c0_1, %c0_2] : memref<1x16xf32, #tpu.memory_space<vmem>>, vector<1x16xf32>
    %2 = vector.broadcast %1 : vector<1x16xf32> to vector<32x16xf32>
    %3 = arith.mulf %0, %2 : vector<32x16xf32>
    %c0_3 = arith.constant 0 : index
    %c0_4 = arith.constant 0 : index
    %4 = vector.load %arg3[%c0_3, %c0_4] : memref<1x16xf32, #tpu.memory_space<vmem>>, vector<1x16xf32>
    %5 = vector.broadcast %4 : vector<1x16xf32> to vector<32x16xf32>
    %6 = arith.addf %3, %5 : vector<32x16xf32>
    %cst = arith.constant 0.000000e+00 : f32
    %7 = vector.broadcast %cst : f32 to vector<32x16xf32>
    %8 = arith.maximumf %6, %7 : vector<32x16xf32>
    %9 = arith.truncf %8 : vector<32x16xf32> to vector<32x16xbf16>
    %c0_5 = arith.constant 0 : index
    %c0_6 = arith.constant 0 : index
    %10 = vector.load %arg4[%c0_5, %c0_6] : memref<16x24xbf16, #tpu.memory_space<vmem>>, vector<16x24xbf16>
    %cst_7 = arith.constant dense<0.000000e+00> : vector<32x24xf32>
    %11 = tpu.matmul %9, %10, %cst_7 {dimension_numbers = #tpu.dot_dimension_numbers<[1], [0], [0], [1], [0, 0, 1, 1], [], []>} : vector<32x16xbf16>, vector<16x24xbf16>, vector<32x24xf32> -> vector<32x24xf32>
    %c0_8 = arith.constant 0 : index
    %c0_9 = arith.constant 0 : index
    %12 = vector.load %arg5[%c0_8, %c0_9] : memref<1x24xf32, #tpu.memory_space<vmem>>, vector<1x24xf32>
    %13 = vector.broadcast %12 : vector<1x24xf32> to vector<32x24xf32>
    %14 = arith.mulf %11, %13 : vector<32x24xf32>
    %c0_10 = arith.constant 0 : index
    %c0_11 = arith.constant 0 : index
    %15 = vector.load %arg6[%c0_10, %c0_11] : memref<1x24xf32, #tpu.memory_space<vmem>>, vector<1x24xf32>
    %16 = vector.broadcast %15 : vector<1x24xf32> to vector<32x24xf32>
    %17 = arith.addf %14, %16 : vector<32x24xf32>
    %cst_12 = arith.constant 0.000000e+00 : f32
    %18 = vector.broadcast %cst_12 : f32 to vector<32x24xf32>
    %19 = arith.maximumf %17, %18 : vector<32x24xf32>
    %c0_13 = arith.constant 0 : index
    %c0_14 = arith.constant 0 : index
    %20 = vector.load %arg7[%c0_13, %c0_14] : memref<32x24xf32, #tpu.memory_space<vmem>>, vector<32x24xf32>
    tpu.vector_store %arg7[%c0_13, %c0_14], %19 {strides = array<i32>} : memref<32x24xf32, #tpu.memory_space<vmem>>, vector<32x24xf32>,
    return
  }
  func.func @transform_0(%arg0: i32) -> (i32, i32) {
    %c0_i32 = arith.constant 0 : i32
    %c0_i32_0 = arith.constant 0 : i32
    return %arg0, %c0_i32 : i32, i32
  }
  func.func @transform_1(%arg0: i32) -> (i32, i32) {
    %c0_i32 = arith.constant 0 : i32
    %c0_i32_0 = arith.constant 0 : i32
    %c0_i32_1 = arith.constant 0 : i32
    return %c0_i32, %c0_i32_0 : i32, i32
  }
  func.func @transform_2(%arg0: i32) -> (i32, i32) {
    %c0_i32 = arith.constant 0 : i32
    %c0_i32_0 = arith.constant 0 : i32
    %c0_i32_1 = arith.constant 0 : i32
    return %c0_i32, %c0_i32_0 : i32, i32
  }
  func.func @transform_3(%arg0: i32) -> (i32, i32) {
    %c0_i32 = arith.constant 0 : i32
    %c0_i32_0 = arith.constant 0 : i32
    %c0_i32_1 = arith.constant 0 : i32
    return %c0_i32, %c0_i32_0 : i32, i32
  }
  func.func @transform_4(%arg0: i32) -> (i32, i32) {
    %c0_i32 = arith.constant 0 : i32
    %c0_i32_0 = arith.constant 0 : i32
    %c0_i32_1 = arith.constant 0 : i32
    return %c0_i32, %c0_i32_0 : i32, i32
  }
  func.func @transform_5(%arg0: i32) -> (i32, i32) {
    %c0_i32 = arith.constant 0 : i32
    %c0_i32_0 = arith.constant 0 : i32
    %c0_i32_1 = arith.constant 0 : i32
    return %c0_i32, %c0_i32_0 : i32, i32
  }
  func.func @transform_6(%arg0: i32) -> (i32, i32) {
    %c0_i32 = arith.constant 0 : i32
    %c0_i32_0 = arith.constant 0 : i32
    return %arg0, %c0_i32 : i32, i32
  }
}

module attributes {stable_mosaic.version = 11 : i64} {
  func.func @_max4_kernel(%arg0: i32, %arg1: memref<32x16xf32, #tpu.memory_space<vmem>>, %arg2: memref<32x16xf32, #tpu.memory_space<vmem>>, %arg3: memref<32x16xf32, #tpu.memory_space<vmem>>, %arg4: memref<32x16xf32, #tpu.memory_space<vmem>>, %arg5: memref<32x16xf32, #tpu.memory_space<vmem>>) attributes {dimension_semantics = [#tpu.dimension_semantics<parallel>], iteration_bounds = array<i64: 1>, scalar_prefetch = 0 : i64, scratch_operands = 0 : i64, tpu.core_type = #tpu.core_type<tc>, window_params = [{transform_indices = @transform_0, window_bounds = array<i64: 32, 16>}, {transform_indices = @transform_1, window_bounds = array<i64: 32, 16>}, {transform_indices = @transform_2, window_bounds = array<i64: 32, 16>}, {transform_indices = @transform_3, window_bounds = array<i64: 32, 16>}, {transform_indices = @transform_4, window_bounds = array<i64: 32, 16>}]} {
    %c0 = arith.constant 0 : index
    %c0_0 = arith.constant 0 : index
    %0 = vector.load %arg1[%c0, %c0_0] : memref<32x16xf32, #tpu.memory_space<vmem>>, vector<32x16xf32>
    %c0_1 = arith.constant 0 : index
    %c0_2 = arith.constant 0 : index
    %1 = vector.load %arg2[%c0_1, %c0_2] : memref<32x16xf32, #tpu.memory_space<vmem>>, vector<32x16xf32>
    %2 = arith.maximumf %0, %1 : vector<32x16xf32>
    %c0_3 = arith.constant 0 : index
    %c0_4 = arith.constant 0 : index
    %3 = vector.load %arg3[%c0_3, %c0_4] : memref<32x16xf32, #tpu.memory_space<vmem>>, vector<32x16xf32>
    %c0_5 = arith.constant 0 : index
    %c0_6 = arith.constant 0 : index
    %4 = vector.load %arg4[%c0_5, %c0_6] : memref<32x16xf32, #tpu.memory_space<vmem>>, vector<32x16xf32>
    %5 = arith.maximumf %3, %4 : vector<32x16xf32>
    %6 = arith.maximumf %2, %5 : vector<32x16xf32>
    %c0_7 = arith.constant 0 : index
    %c0_8 = arith.constant 0 : index
    %7 = vector.load %arg5[%c0_7, %c0_8] : memref<32x16xf32, #tpu.memory_space<vmem>>, vector<32x16xf32>
    tpu.vector_store %arg5[%c0_7, %c0_8], %6 {strides = array<i32>} : memref<32x16xf32, #tpu.memory_space<vmem>>, vector<32x16xf32>,
    return
  }
  func.func @transform_0(%arg0: i32) -> (i32, i32) {
    %c0_i32 = arith.constant 0 : i32
    %c0_i32_0 = arith.constant 0 : i32
    return %arg0, %c0_i32 : i32, i32
  }
  func.func @transform_1(%arg0: i32) -> (i32, i32) {
    %c0_i32 = arith.constant 0 : i32
    %c0_i32_0 = arith.constant 0 : i32
    return %arg0, %c0_i32 : i32, i32
  }
  func.func @transform_2(%arg0: i32) -> (i32, i32) {
    %c0_i32 = arith.constant 0 : i32
    %c0_i32_0 = arith.constant 0 : i32
    return %arg0, %c0_i32 : i32, i32
  }
  func.func @transform_3(%arg0: i32) -> (i32, i32) {
    %c0_i32 = arith.constant 0 : i32
    %c0_i32_0 = arith.constant 0 : i32
    return %arg0, %c0_i32 : i32, i32
  }
  func.func @transform_4(%arg0: i32) -> (i32, i32) {
    %c0_i32 = arith.constant 0 : i32
    %c0_i32_0 = arith.constant 0 : i32
    return %arg0, %c0_i32 : i32, i32
  }
}

module attributes {stable_mosaic.version = 11 : i64} {
  func.func @kernel(%arg0: i32, %arg1: memref<1x42x24xbf16, #tpu.memory_space<vmem>>, %arg2: memref<9x24x8xbf16, #tpu.memory_space<vmem>>, %arg3: memref<1x24x8xf32, #tpu.memory_space<vmem>>) attributes {dimension_semantics = [#tpu.dimension_semantics<parallel>], iteration_bounds = array<i64: 2>, scalar_prefetch = 0 : i64, scratch_operands = 0 : i64, tpu.core_type = #tpu.core_type<tc>, window_params = [{transform_indices = @transform_0, window_bounds = array<i64: 1, 42, 24>}, {pipeline_mode = #tpu.pipeline_mode<synchronous>, transform_indices = @transform_1, window_bounds = array<i64: 9, 24, 8>}, {transform_indices = @transform_2, window_bounds = array<i64: 1, 24, 8>}]} {
    %cst = arith.constant 0.000000e+00 : f32
    %0 = vector.broadcast %cst : f32 to vector<24x8xf32>
    %c0 = arith.constant 0 : index
    %c0_0 = arith.constant 0 : index
    %c0_1 = arith.constant 0 : index
    %1 = vector.load %arg1[%c0, %c0_0, %c0_1] : memref<1x42x24xbf16, #tpu.memory_space<vmem>>, vector<1x24x24xbf16>
    %2 = vector.shape_cast %1 : vector<1x24x24xbf16> to vector<24x24xbf16>
    %c0_2 = arith.constant 0 : index
    %c0_3 = arith.constant 0 : index
    %c0_4 = arith.constant 0 : index
    %3 = vector.load %arg2[%c0_2, %c0_3, %c0_4] : memref<9x24x8xbf16, #tpu.memory_space<vmem>>, vector<1x24x8xbf16>
    %4 = vector.shape_cast %3 : vector<1x24x8xbf16> to vector<24x8xbf16>
    %cst_5 = arith.constant dense<0.000000e+00> : vector<24x8xf32>
    %5 = tpu.matmul %2, %4, %cst_5 {dimension_numbers = #tpu.dot_dimension_numbers<[1], [0], [0], [1], [0, 0, 1, 1], [], []>} : vector<24x24xbf16>, vector<24x8xbf16>, vector<24x8xf32> -> vector<24x8xf32>
    %6 = arith.addf %0, %5 : vector<24x8xf32>
    %c0_6 = arith.constant 0 : index
    %c1 = arith.constant 1 : index
    %c0_7 = arith.constant 0 : index
    %7 = vector.load %arg1[%c0_6, %c1, %c0_7] : memref<1x42x24xbf16, #tpu.memory_space<vmem>>, vector<1x24x24xbf16>
    %8 = vector.shape_cast %7 : vector<1x24x24xbf16> to vector<24x24xbf16>
    %c1_8 = arith.constant 1 : index
    %c0_9 = arith.constant 0 : index
    %c0_10 = arith.constant 0 : index
    %9 = vector.load %arg2[%c1_8, %c0_9, %c0_10] : memref<9x24x8xbf16, #tpu.memory_space<vmem>>, vector<1x24x8xbf16>
    %10 = vector.shape_cast %9 : vector<1x24x8xbf16> to vector<24x8xbf16>
    %cst_11 = arith.constant dense<0.000000e+00> : vector<24x8xf32>
    %11 = tpu.matmul %8, %10, %cst_11 {dimension_numbers = #tpu.dot_dimension_numbers<[1], [0], [0], [1], [0, 0, 1, 1], [], []>} : vector<24x24xbf16>, vector<24x8xbf16>, vector<24x8xf32> -> vector<24x8xf32>
    %12 = arith.addf %6, %11 : vector<24x8xf32>
    %c0_12 = arith.constant 0 : index
    %c2 = arith.constant 2 : index
    %c0_13 = arith.constant 0 : index
    %13 = vector.load %arg1[%c0_12, %c2, %c0_13] : memref<1x42x24xbf16, #tpu.memory_space<vmem>>, vector<1x24x24xbf16>
    %14 = vector.shape_cast %13 : vector<1x24x24xbf16> to vector<24x24xbf16>
    %c2_14 = arith.constant 2 : index
    %c0_15 = arith.constant 0 : index
    %c0_16 = arith.constant 0 : index
    %15 = vector.load %arg2[%c2_14, %c0_15, %c0_16] : memref<9x24x8xbf16, #tpu.memory_space<vmem>>, vector<1x24x8xbf16>
    %16 = vector.shape_cast %15 : vector<1x24x8xbf16> to vector<24x8xbf16>
    %cst_17 = arith.constant dense<0.000000e+00> : vector<24x8xf32>
    %17 = tpu.matmul %14, %16, %cst_17 {dimension_numbers = #tpu.dot_dimension_numbers<[1], [0], [0], [1], [0, 0, 1, 1], [], []>} : vector<24x24xbf16>, vector<24x8xbf16>, vector<24x8xf32> -> vector<24x8xf32>
    %18 = arith.addf %12, %17 : vector<24x8xf32>
    %c0_18 = arith.constant 0 : index
    %c6 = arith.constant 6 : index
    %c0_19 = arith.constant 0 : index
    %19 = vector.load %arg1[%c0_18, %c6, %c0_19] : memref<1x42x24xbf16, #tpu.memory_space<vmem>>, vector<1x24x24xbf16>
    %20 = vector.shape_cast %19 : vector<1x24x24xbf16> to vector<24x24xbf16>
    %c3 = arith.constant 3 : index
    %c0_20 = arith.constant 0 : index
    %c0_21 = arith.constant 0 : index
    %21 = vector.load %arg2[%c3, %c0_20, %c0_21] : memref<9x24x8xbf16, #tpu.memory_space<vmem>>, vector<1x24x8xbf16>
    %22 = vector.shape_cast %21 : vector<1x24x8xbf16> to vector<24x8xbf16>
    %cst_22 = arith.constant dense<0.000000e+00> : vector<24x8xf32>
    %23 = tpu.matmul %20, %22, %cst_22 {dimension_numbers = #tpu.dot_dimension_numbers<[1], [0], [0], [1], [0, 0, 1, 1], [], []>} : vector<24x24xbf16>, vector<24x8xbf16>, vector<24x8xf32> -> vector<24x8xf32>
    %24 = arith.addf %18, %23 : vector<24x8xf32>
    %c0_23 = arith.constant 0 : index
    %c7 = arith.constant 7 : index
    %c0_24 = arith.constant 0 : index
    %25 = vector.load %arg1[%c0_23, %c7, %c0_24] : memref<1x42x24xbf16, #tpu.memory_space<vmem>>, vector<1x24x24xbf16>
    %26 = vector.shape_cast %25 : vector<1x24x24xbf16> to vector<24x24xbf16>
    %c4 = arith.constant 4 : index
    %c0_25 = arith.constant 0 : index
    %c0_26 = arith.constant 0 : index
    %27 = vector.load %arg2[%c4, %c0_25, %c0_26] : memref<9x24x8xbf16, #tpu.memory_space<vmem>>, vector<1x24x8xbf16>
    %28 = vector.shape_cast %27 : vector<1x24x8xbf16> to vector<24x8xbf16>
    %cst_27 = arith.constant dense<0.000000e+00> : vector<24x8xf32>
    %29 = tpu.matmul %26, %28, %cst_27 {dimension_numbers = #tpu.dot_dimension_numbers<[1], [0], [0], [1], [0, 0, 1, 1], [], []>} : vector<24x24xbf16>, vector<24x8xbf16>, vector<24x8xf32> -> vector<24x8xf32>
    %30 = arith.addf %24, %29 : vector<24x8xf32>
    %c0_28 = arith.constant 0 : index
    %c8 = arith.constant 8 : index
    %c0_29 = arith.constant 0 : index
    %31 = vector.load %arg1[%c0_28, %c8, %c0_29] : memref<1x42x24xbf16, #tpu.memory_space<vmem>>, vector<1x24x24xbf16>
    %32 = vector.shape_cast %31 : vector<1x24x24xbf16> to vector<24x24xbf16>
    %c5 = arith.constant 5 : index
    %c0_30 = arith.constant 0 : index
    %c0_31 = arith.constant 0 : index
    %33 = vector.load %arg2[%c5, %c0_30, %c0_31] : memref<9x24x8xbf16, #tpu.memory_space<vmem>>, vector<1x24x8xbf16>
    %34 = vector.shape_cast %33 : vector<1x24x8xbf16> to vector<24x8xbf16>
    %cst_32 = arith.constant dense<0.000000e+00> : vector<24x8xf32>
    %35 = tpu.matmul %32, %34, %cst_32 {dimension_numbers = #tpu.dot_dimension_numbers<[1], [0], [0], [1], [0, 0, 1, 1], [], []>} : vector<24x24xbf16>, vector<24x8xbf16>, vector<24x8xf32> -> vector<24x8xf32>
    %36 = arith.addf %30, %35 : vector<24x8xf32>
    %c0_33 = arith.constant 0 : index
    %c12 = arith.constant 12 : index
    %c0_34 = arith.constant 0 : index
    %37 = vector.load %arg1[%c0_33, %c12, %c0_34] : memref<1x42x24xbf16, #tpu.memory_space<vmem>>, vector<1x24x24xbf16>
    %38 = vector.shape_cast %37 : vector<1x24x24xbf16> to vector<24x24xbf16>
    %c6_35 = arith.constant 6 : index
    %c0_36 = arith.constant 0 : index
    %c0_37 = arith.constant 0 : index
    %39 = vector.load %arg2[%c6_35, %c0_36, %c0_37] : memref<9x24x8xbf16, #tpu.memory_space<vmem>>, vector<1x24x8xbf16>
    %40 = vector.shape_cast %39 : vector<1x24x8xbf16> to vector<24x8xbf16>
    %cst_38 = arith.constant dense<0.000000e+00> : vector<24x8xf32>
    %41 = tpu.matmul %38, %40, %cst_38 {dimension_numbers = #tpu.dot_dimension_numbers<[1], [0], [0], [1], [0, 0, 1, 1], [], []>} : vector<24x24xbf16>, vector<24x8xbf16>, vector<24x8xf32> -> vector<24x8xf32>
    %42 = arith.addf %36, %41 : vector<24x8xf32>
    %c0_39 = arith.constant 0 : index
    %c13 = arith.constant 13 : index
    %c0_40 = arith.constant 0 : index
    %43 = vector.load %arg1[%c0_39, %c13, %c0_40] : memref<1x42x24xbf16, #tpu.memory_space<vmem>>, vector<1x24x24xbf16>
    %44 = vector.shape_cast %43 : vector<1x24x24xbf16> to vector<24x24xbf16>
    %c7_41 = arith.constant 7 : index
    %c0_42 = arith.constant 0 : index
    %c0_43 = arith.constant 0 : index
    %45 = vector.load %arg2[%c7_41, %c0_42, %c0_43] : memref<9x24x8xbf16, #tpu.memory_space<vmem>>, vector<1x24x8xbf16>
    %46 = vector.shape_cast %45 : vector<1x24x8xbf16> to vector<24x8xbf16>
    %cst_44 = arith.constant dense<0.000000e+00> : vector<24x8xf32>
    %47 = tpu.matmul %44, %46, %cst_44 {dimension_numbers = #tpu.dot_dimension_numbers<[1], [0], [0], [1], [0, 0, 1, 1], [], []>} : vector<24x24xbf16>, vector<24x8xbf16>, vector<24x8xf32> -> vector<24x8xf32>
    %48 = arith.addf %42, %47 : vector<24x8xf32>
    %c0_45 = arith.constant 0 : index
    %c14 = arith.constant 14 : index
    %c0_46 = arith.constant 0 : index
    %49 = vector.load %arg1[%c0_45, %c14, %c0_46] : memref<1x42x24xbf16, #tpu.memory_space<vmem>>, vector<1x24x24xbf16>
    %50 = vector.shape_cast %49 : vector<1x24x24xbf16> to vector<24x24xbf16>
    %c8_47 = arith.constant 8 : index
    %c0_48 = arith.constant 0 : index
    %c0_49 = arith.constant 0 : index
    %51 = vector.load %arg2[%c8_47, %c0_48, %c0_49] : memref<9x24x8xbf16, #tpu.memory_space<vmem>>, vector<1x24x8xbf16>
    %52 = vector.shape_cast %51 : vector<1x24x8xbf16> to vector<24x8xbf16>
    %cst_50 = arith.constant dense<0.000000e+00> : vector<24x8xf32>
    %53 = tpu.matmul %50, %52, %cst_50 {dimension_numbers = #tpu.dot_dimension_numbers<[1], [0], [0], [1], [0, 0, 1, 1], [], []>} : vector<24x24xbf16>, vector<24x8xbf16>, vector<24x8xf32> -> vector<24x8xf32>
    %54 = arith.addf %48, %53 : vector<24x8xf32>
    %c0_51 = arith.constant 0 : index
    %c0_52 = arith.constant 0 : index
    %c0_53 = arith.constant 0 : index
    %55 = vector.load %arg3[%c0_51, %c0_52, %c0_53] : memref<1x24x8xf32, #tpu.memory_space<vmem>>, vector<1x24x8xf32>
    %56 = vector.shape_cast %55 : vector<1x24x8xf32> to vector<24x8xf32>
    %57 = vector.shape_cast %54 : vector<24x8xf32> to vector<1x24x8xf32>
    tpu.vector_store %arg3[%c0_51, %c0_52, %c0_53], %57 {strides = array<i32>} : memref<1x24x8xf32, #tpu.memory_space<vmem>>, vector<1x24x8xf32>,
    return
  }
  func.func @transform_0(%arg0: i32) -> (i32, i32, i32) {
    %c0_i32 = arith.constant 0 : i32
    %c0_i32_0 = arith.constant 0 : i32
    %c0_i32_1 = arith.constant 0 : i32
    return %arg0, %c0_i32, %c0_i32_0 : i32, i32, i32
  }
  func.func @transform_1(%arg0: i32) -> (i32, i32, i32) {
    %c0_i32 = arith.constant 0 : i32
    %c0_i32_0 = arith.constant 0 : i32
    %c0_i32_1 = arith.constant 0 : i32
    %c0_i32_2 = arith.constant 0 : i32
    return %c0_i32, %c0_i32_0, %c0_i32_1 : i32, i32, i32
  }
  func.func @transform_2(%arg0: i32) -> (i32, i32, i32) {
    %c0_i32 = arith.constant 0 : i32
    %c0_i32_0 = arith.constant 0 : i32
    %c0_i32_1 = arith.constant 0 : i32
    return %arg0, %c0_i32, %c0_i32_0 : i32, i32, i32
  }
}

module attributes {stable_mosaic.version = 11 : i64} {
  func.func @_bn_relu_mm_bn_relu_kernel(%arg0: i32, %arg1: memref<32x24xf32, #tpu.memory_space<vmem>>, %arg2: memref<1x24xf32, #tpu.memory_space<vmem>>, %arg3: memref<1x24xf32, #tpu.memory_space<vmem>>, %arg4: memref<24x24xbf16, #tpu.memory_space<vmem>>, %arg5: memref<1x24xf32, #tpu.memory_space<vmem>>, %arg6: memref<1x24xf32, #tpu.memory_space<vmem>>, %arg7: memref<32x24xf32, #tpu.memory_space<vmem>>) attributes {dimension_semantics = [#tpu.dimension_semantics<parallel>], iteration_bounds = array<i64: 1>, scalar_prefetch = 0 : i64, scratch_operands = 0 : i64, tpu.core_type = #tpu.core_type<tc>, window_params = [{transform_indices = @transform_0, window_bounds = array<i64: 32, 24>}, {pipeline_mode = #tpu.pipeline_mode<synchronous>, transform_indices = @transform_1, window_bounds = array<i64: 1, 24>}, {pipeline_mode = #tpu.pipeline_mode<synchronous>, transform_indices = @transform_2, window_bounds = array<i64: 1, 24>}, {pipeline_mode = #tpu.pipeline_mode<synchronous>, transform_indices = @transform_3, window_bounds = array<i64: 24, 24>}, {pipeline_mode = #tpu.pipeline_mode<synchronous>, transform_indices = @transform_4, window_bounds = array<i64: 1, 24>}, {pipeline_mode = #tpu.pipeline_mode<synchronous>, transform_indices = @transform_5, window_bounds = array<i64: 1, 24>}, {transform_indices = @transform_6, window_bounds = array<i64: 32, 24>}]} {
    %c0 = arith.constant 0 : index
    %c0_0 = arith.constant 0 : index
    %0 = vector.load %arg1[%c0, %c0_0] : memref<32x24xf32, #tpu.memory_space<vmem>>, vector<32x24xf32>
    %c0_1 = arith.constant 0 : index
    %c0_2 = arith.constant 0 : index
    %1 = vector.load %arg2[%c0_1, %c0_2] : memref<1x24xf32, #tpu.memory_space<vmem>>, vector<1x24xf32>
    %2 = vector.broadcast %1 : vector<1x24xf32> to vector<32x24xf32>
    %3 = arith.mulf %0, %2 : vector<32x24xf32>
    %c0_3 = arith.constant 0 : index
    %c0_4 = arith.constant 0 : index
    %4 = vector.load %arg3[%c0_3, %c0_4] : memref<1x24xf32, #tpu.memory_space<vmem>>, vector<1x24xf32>
    %5 = vector.broadcast %4 : vector<1x24xf32> to vector<32x24xf32>
    %6 = arith.addf %3, %5 : vector<32x24xf32>
    %cst = arith.constant 0.000000e+00 : f32
    %7 = vector.broadcast %cst : f32 to vector<32x24xf32>
    %8 = arith.maximumf %6, %7 : vector<32x24xf32>
    %9 = arith.truncf %8 : vector<32x24xf32> to vector<32x24xbf16>
    %c0_5 = arith.constant 0 : index
    %c0_6 = arith.constant 0 : index
    %10 = vector.load %arg4[%c0_5, %c0_6] : memref<24x24xbf16, #tpu.memory_space<vmem>>, vector<24x24xbf16>
    %cst_7 = arith.constant dense<0.000000e+00> : vector<32x24xf32>
    %11 = tpu.matmul %9, %10, %cst_7 {dimension_numbers = #tpu.dot_dimension_numbers<[1], [0], [0], [1], [0, 0, 1, 1], [], []>} : vector<32x24xbf16>, vector<24x24xbf16>, vector<32x24xf32> -> vector<32x24xf32>
    %c0_8 = arith.constant 0 : index
    %c0_9 = arith.constant 0 : index
    %12 = vector.load %arg5[%c0_8, %c0_9] : memref<1x24xf32, #tpu.memory_space<vmem>>, vector<1x24xf32>
    %13 = vector.broadcast %12 : vector<1x24xf32> to vector<32x24xf32>
    %14 = arith.mulf %11, %13 : vector<32x24xf32>
    %c0_10 = arith.constant 0 : index
    %c0_11 = arith.constant 0 : index
    %15 = vector.load %arg6[%c0_10, %c0_11] : memref<1x24xf32, #tpu.memory_space<vmem>>, vector<1x24xf32>
    %16 = vector.broadcast %15 : vector<1x24xf32> to vector<32x24xf32>
    %17 = arith.addf %14, %16 : vector<32x24xf32>
    %cst_12 = arith.constant 0.000000e+00 : f32
    %18 = vector.broadcast %cst_12 : f32 to vector<32x24xf32>
    %19 = arith.maximumf %17, %18 : vector<32x24xf32>
    %c0_13 = arith.constant 0 : index
    %c0_14 = arith.constant 0 : index
    %20 = vector.load %arg7[%c0_13, %c0_14] : memref<32x24xf32, #tpu.memory_space<vmem>>, vector<32x24xf32>
    tpu.vector_store %arg7[%c0_13, %c0_14], %19 {strides = array<i32>} : memref<32x24xf32, #tpu.memory_space<vmem>>, vector<32x24xf32>,
    return
  }
  func.func @transform_0(%arg0: i32) -> (i32, i32) {
    %c0_i32 = arith.constant 0 : i32
    %c0_i32_0 = arith.constant 0 : i32
    return %arg0, %c0_i32 : i32, i32
  }
  func.func @transform_1(%arg0: i32) -> (i32, i32) {
    %c0_i32 = arith.constant 0 : i32
    %c0_i32_0 = arith.constant 0 : i32
    %c0_i32_1 = arith.constant 0 : i32
    return %c0_i32, %c0_i32_0 : i32, i32
  }
  func.func @transform_2(%arg0: i32) -> (i32, i32) {
    %c0_i32 = arith.constant 0 : i32
    %c0_i32_0 = arith.constant 0 : i32
    %c0_i32_1 = arith.constant 0 : i32
    return %c0_i32, %c0_i32_0 : i32, i32
  }
  func.func @transform_3(%arg0: i32) -> (i32, i32) {
    %c0_i32 = arith.constant 0 : i32
    %c0_i32_0 = arith.constant 0 : i32
    %c0_i32_1 = arith.constant 0 : i32
    return %c0_i32, %c0_i32_0 : i32, i32
  }
  func.func @transform_4(%arg0: i32) -> (i32, i32) {
    %c0_i32 = arith.constant 0 : i32
    %c0_i32_0 = arith.constant 0 : i32
    %c0_i32_1 = arith.constant 0 : i32
    return %c0_i32, %c0_i32_0 : i32, i32
  }
  func.func @transform_5(%arg0: i32) -> (i32, i32) {
    %c0_i32 = arith.constant 0 : i32
    %c0_i32_0 = arith.constant 0 : i32
    %c0_i32_1 = arith.constant 0 : i32
    return %c0_i32, %c0_i32_0 : i32, i32
  }
  func.func @transform_6(%arg0: i32) -> (i32, i32) {
    %c0_i32 = arith.constant 0 : i32
    %c0_i32_0 = arith.constant 0 : i32
    return %arg0, %c0_i32 : i32, i32
  }
}

module attributes {stable_mosaic.version = 11 : i64} {
  func.func @_bn_relu_mm_bn_relu_kernel(%arg0: i32, %arg1: memref<8x16xf32, #tpu.memory_space<vmem>>, %arg2: memref<1x16xf32, #tpu.memory_space<vmem>>, %arg3: memref<1x16xf32, #tpu.memory_space<vmem>>, %arg4: memref<16x24xbf16, #tpu.memory_space<vmem>>, %arg5: memref<1x24xf32, #tpu.memory_space<vmem>>, %arg6: memref<1x24xf32, #tpu.memory_space<vmem>>, %arg7: memref<8x24xf32, #tpu.memory_space<vmem>>) attributes {dimension_semantics = [#tpu.dimension_semantics<parallel>], iteration_bounds = array<i64: 1>, scalar_prefetch = 0 : i64, scratch_operands = 0 : i64, tpu.core_type = #tpu.core_type<tc>, window_params = [{transform_indices = @transform_0, window_bounds = array<i64: 8, 16>}, {pipeline_mode = #tpu.pipeline_mode<synchronous>, transform_indices = @transform_1, window_bounds = array<i64: 1, 16>}, {pipeline_mode = #tpu.pipeline_mode<synchronous>, transform_indices = @transform_2, window_bounds = array<i64: 1, 16>}, {pipeline_mode = #tpu.pipeline_mode<synchronous>, transform_indices = @transform_3, window_bounds = array<i64: 16, 24>}, {pipeline_mode = #tpu.pipeline_mode<synchronous>, transform_indices = @transform_4, window_bounds = array<i64: 1, 24>}, {pipeline_mode = #tpu.pipeline_mode<synchronous>, transform_indices = @transform_5, window_bounds = array<i64: 1, 24>}, {transform_indices = @transform_6, window_bounds = array<i64: 8, 24>}]} {
    %c0 = arith.constant 0 : index
    %c0_0 = arith.constant 0 : index
    %0 = vector.load %arg1[%c0, %c0_0] : memref<8x16xf32, #tpu.memory_space<vmem>>, vector<8x16xf32>
    %c0_1 = arith.constant 0 : index
    %c0_2 = arith.constant 0 : index
    %1 = vector.load %arg2[%c0_1, %c0_2] : memref<1x16xf32, #tpu.memory_space<vmem>>, vector<1x16xf32>
    %2 = vector.broadcast %1 : vector<1x16xf32> to vector<8x16xf32>
    %3 = arith.mulf %0, %2 : vector<8x16xf32>
    %c0_3 = arith.constant 0 : index
    %c0_4 = arith.constant 0 : index
    %4 = vector.load %arg3[%c0_3, %c0_4] : memref<1x16xf32, #tpu.memory_space<vmem>>, vector<1x16xf32>
    %5 = vector.broadcast %4 : vector<1x16xf32> to vector<8x16xf32>
    %6 = arith.addf %3, %5 : vector<8x16xf32>
    %cst = arith.constant 0.000000e+00 : f32
    %7 = vector.broadcast %cst : f32 to vector<8x16xf32>
    %8 = arith.maximumf %6, %7 : vector<8x16xf32>
    %9 = arith.truncf %8 : vector<8x16xf32> to vector<8x16xbf16>
    %c0_5 = arith.constant 0 : index
    %c0_6 = arith.constant 0 : index
    %10 = vector.load %arg4[%c0_5, %c0_6] : memref<16x24xbf16, #tpu.memory_space<vmem>>, vector<16x24xbf16>
    %cst_7 = arith.constant dense<0.000000e+00> : vector<8x24xf32>
    %11 = tpu.matmul %9, %10, %cst_7 {dimension_numbers = #tpu.dot_dimension_numbers<[1], [0], [0], [1], [0, 0, 1, 1], [], []>} : vector<8x16xbf16>, vector<16x24xbf16>, vector<8x24xf32> -> vector<8x24xf32>
    %c0_8 = arith.constant 0 : index
    %c0_9 = arith.constant 0 : index
    %12 = vector.load %arg5[%c0_8, %c0_9] : memref<1x24xf32, #tpu.memory_space<vmem>>, vector<1x24xf32>
    %13 = vector.broadcast %12 : vector<1x24xf32> to vector<8x24xf32>
    %14 = arith.mulf %11, %13 : vector<8x24xf32>
    %c0_10 = arith.constant 0 : index
    %c0_11 = arith.constant 0 : index
    %15 = vector.load %arg6[%c0_10, %c0_11] : memref<1x24xf32, #tpu.memory_space<vmem>>, vector<1x24xf32>
    %16 = vector.broadcast %15 : vector<1x24xf32> to vector<8x24xf32>
    %17 = arith.addf %14, %16 : vector<8x24xf32>
    %cst_12 = arith.constant 0.000000e+00 : f32
    %18 = vector.broadcast %cst_12 : f32 to vector<8x24xf32>
    %19 = arith.maximumf %17, %18 : vector<8x24xf32>
    %c0_13 = arith.constant 0 : index
    %c0_14 = arith.constant 0 : index
    %20 = vector.load %arg7[%c0_13, %c0_14] : memref<8x24xf32, #tpu.memory_space<vmem>>, vector<8x24xf32>
    tpu.vector_store %arg7[%c0_13, %c0_14], %19 {strides = array<i32>} : memref<8x24xf32, #tpu.memory_space<vmem>>, vector<8x24xf32>,
    return
  }
  func.func @transform_0(%arg0: i32) -> (i32, i32) {
    %c0_i32 = arith.constant 0 : i32
    %c0_i32_0 = arith.constant 0 : i32
    return %arg0, %c0_i32 : i32, i32
  }
  func.func @transform_1(%arg0: i32) -> (i32, i32) {
    %c0_i32 = arith.constant 0 : i32
    %c0_i32_0 = arith.constant 0 : i32
    %c0_i32_1 = arith.constant 0 : i32
    return %c0_i32, %c0_i32_0 : i32, i32
  }
  func.func @transform_2(%arg0: i32) -> (i32, i32) {
    %c0_i32 = arith.constant 0 : i32
    %c0_i32_0 = arith.constant 0 : i32
    %c0_i32_1 = arith.constant 0 : i32
    return %c0_i32, %c0_i32_0 : i32, i32
  }
  func.func @transform_3(%arg0: i32) -> (i32, i32) {
    %c0_i32 = arith.constant 0 : i32
    %c0_i32_0 = arith.constant 0 : i32
    %c0_i32_1 = arith.constant 0 : i32
    return %c0_i32, %c0_i32_0 : i32, i32
  }
  func.func @transform_4(%arg0: i32) -> (i32, i32) {
    %c0_i32 = arith.constant 0 : i32
    %c0_i32_0 = arith.constant 0 : i32
    %c0_i32_1 = arith.constant 0 : i32
    return %c0_i32, %c0_i32_0 : i32, i32
  }
  func.func @transform_5(%arg0: i32) -> (i32, i32) {
    %c0_i32 = arith.constant 0 : i32
    %c0_i32_0 = arith.constant 0 : i32
    %c0_i32_1 = arith.constant 0 : i32
    return %c0_i32, %c0_i32_0 : i32, i32
  }
  func.func @transform_6(%arg0: i32) -> (i32, i32) {
    %c0_i32 = arith.constant 0 : i32
    %c0_i32_0 = arith.constant 0 : i32
    return %arg0, %c0_i32 : i32, i32
  }
}

module attributes {stable_mosaic.version = 11 : i64} {
  func.func @_bn_relu_avg4_mm_kernel(%arg0: i32, %arg1: memref<8x32xf32, #tpu.memory_space<vmem>>, %arg2: memref<8x32xf32, #tpu.memory_space<vmem>>, %arg3: memref<8x32xf32, #tpu.memory_space<vmem>>, %arg4: memref<8x32xf32, #tpu.memory_space<vmem>>, %arg5: memref<1x32xf32, #tpu.memory_space<vmem>>, %arg6: memref<1x32xf32, #tpu.memory_space<vmem>>, %arg7: memref<32x16xbf16, #tpu.memory_space<vmem>>, %arg8: memref<8x16xf32, #tpu.memory_space<vmem>>) attributes {dimension_semantics = [#tpu.dimension_semantics<parallel>], iteration_bounds = array<i64: 1>, scalar_prefetch = 0 : i64, scratch_operands = 0 : i64, tpu.core_type = #tpu.core_type<tc>, window_params = [{transform_indices = @transform_0, window_bounds = array<i64: 8, 32>}, {transform_indices = @transform_1, window_bounds = array<i64: 8, 32>}, {transform_indices = @transform_2, window_bounds = array<i64: 8, 32>}, {transform_indices = @transform_3, window_bounds = array<i64: 8, 32>}, {pipeline_mode = #tpu.pipeline_mode<synchronous>, transform_indices = @transform_4, window_bounds = array<i64: 1, 32>}, {pipeline_mode = #tpu.pipeline_mode<synchronous>, transform_indices = @transform_5, window_bounds = array<i64: 1, 32>}, {pipeline_mode = #tpu.pipeline_mode<synchronous>, transform_indices = @transform_6, window_bounds = array<i64: 32, 16>}, {transform_indices = @transform_7, window_bounds = array<i64: 8, 16>}]} {
    %c0 = arith.constant 0 : index
    %c0_0 = arith.constant 0 : index
    %0 = vector.load %arg5[%c0, %c0_0] : memref<1x32xf32, #tpu.memory_space<vmem>>, vector<1x32xf32>
    %c0_1 = arith.constant 0 : index
    %c0_2 = arith.constant 0 : index
    %1 = vector.load %arg6[%c0_1, %c0_2] : memref<1x32xf32, #tpu.memory_space<vmem>>, vector<1x32xf32>
    %c0_3 = arith.constant 0 : index
    %c0_4 = arith.constant 0 : index
    %2 = vector.load %arg1[%c0_3, %c0_4] : memref<8x32xf32, #tpu.memory_space<vmem>>, vector<8x32xf32>
    %3 = vector.broadcast %0 : vector<1x32xf32> to vector<8x32xf32>
    %4 = arith.mulf %2, %3 : vector<8x32xf32>
    %5 = vector.broadcast %1 : vector<1x32xf32> to vector<8x32xf32>
    %6 = arith.addf %4, %5 : vector<8x32xf32>
    %cst = arith.constant 0.000000e+00 : f32
    %7 = vector.broadcast %cst : f32 to vector<8x32xf32>
    %8 = arith.maximumf %6, %7 : vector<8x32xf32>
    %c0_5 = arith.constant 0 : index
    %c0_6 = arith.constant 0 : index
    %9 = vector.load %arg2[%c0_5, %c0_6] : memref<8x32xf32, #tpu.memory_space<vmem>>, vector<8x32xf32>
    %10 = vector.broadcast %0 : vector<1x32xf32> to vector<8x32xf32>
    %11 = arith.mulf %9, %10 : vector<8x32xf32>
    %12 = vector.broadcast %1 : vector<1x32xf32> to vector<8x32xf32>
    %13 = arith.addf %11, %12 : vector<8x32xf32>
    %cst_7 = arith.constant 0.000000e+00 : f32
    %14 = vector.broadcast %cst_7 : f32 to vector<8x32xf32>
    %15 = arith.maximumf %13, %14 : vector<8x32xf32>
    %16 = arith.addf %8, %15 : vector<8x32xf32>
    %c0_8 = arith.constant 0 : index
    %c0_9 = arith.constant 0 : index
    %17 = vector.load %arg3[%c0_8, %c0_9] : memref<8x32xf32, #tpu.memory_space<vmem>>, vector<8x32xf32>
    %18 = vector.broadcast %0 : vector<1x32xf32> to vector<8x32xf32>
    %19 = arith.mulf %17, %18 : vector<8x32xf32>
    %20 = vector.broadcast %1 : vector<1x32xf32> to vector<8x32xf32>
    %21 = arith.addf %19, %20 : vector<8x32xf32>
    %cst_10 = arith.constant 0.000000e+00 : f32
    %22 = vector.broadcast %cst_10 : f32 to vector<8x32xf32>
    %23 = arith.maximumf %21, %22 : vector<8x32xf32>
    %24 = arith.addf %16, %23 : vector<8x32xf32>
    %c0_11 = arith.constant 0 : index
    %c0_12 = arith.constant 0 : index
    %25 = vector.load %arg4[%c0_11, %c0_12] : memref<8x32xf32, #tpu.memory_space<vmem>>, vector<8x32xf32>
    %26 = vector.broadcast %0 : vector<1x32xf32> to vector<8x32xf32>
    %27 = arith.mulf %25, %26 : vector<8x32xf32>
    %28 = vector.broadcast %1 : vector<1x32xf32> to vector<8x32xf32>
    %29 = arith.addf %27, %28 : vector<8x32xf32>
    %cst_13 = arith.constant 0.000000e+00 : f32
    %30 = vector.broadcast %cst_13 : f32 to vector<8x32xf32>
    %31 = arith.maximumf %29, %30 : vector<8x32xf32>
    %32 = arith.addf %24, %31 : vector<8x32xf32>
    %cst_14 = arith.constant 2.500000e-01 : f32
    %33 = vector.broadcast %cst_14 : f32 to vector<8x32xf32>
    %34 = arith.mulf %32, %33 : vector<8x32xf32>
    %35 = arith.truncf %34 : vector<8x32xf32> to vector<8x32xbf16>
    %c0_15 = arith.constant 0 : index
    %c0_16 = arith.constant 0 : index
    %36 = vector.load %arg7[%c0_15, %c0_16] : memref<32x16xbf16, #tpu.memory_space<vmem>>, vector<32x16xbf16>
    %cst_17 = arith.constant dense<0.000000e+00> : vector<8x16xf32>
    %37 = tpu.matmul %35, %36, %cst_17 {dimension_numbers = #tpu.dot_dimension_numbers<[1], [0], [0], [1], [0, 0, 1, 1], [], []>} : vector<8x32xbf16>, vector<32x16xbf16>, vector<8x16xf32> -> vector<8x16xf32>
    %c0_18 = arith.constant 0 : index
    %c0_19 = arith.constant 0 : index
    %38 = vector.load %arg8[%c0_18, %c0_19] : memref<8x16xf32, #tpu.memory_space<vmem>>, vector<8x16xf32>
    tpu.vector_store %arg8[%c0_18, %c0_19], %37 {strides = array<i32>} : memref<8x16xf32, #tpu.memory_space<vmem>>, vector<8x16xf32>,
    return
  }
  func.func @transform_0(%arg0: i32) -> (i32, i32) {
    %c0_i32 = arith.constant 0 : i32
    %c0_i32_0 = arith.constant 0 : i32
    return %arg0, %c0_i32 : i32, i32
  }
  func.func @transform_1(%arg0: i32) -> (i32, i32) {
    %c0_i32 = arith.constant 0 : i32
    %c0_i32_0 = arith.constant 0 : i32
    return %arg0, %c0_i32 : i32, i32
  }
  func.func @transform_2(%arg0: i32) -> (i32, i32) {
    %c0_i32 = arith.constant 0 : i32
    %c0_i32_0 = arith.constant 0 : i32
    return %arg0, %c0_i32 : i32, i32
  }
  func.func @transform_3(%arg0: i32) -> (i32, i32) {
    %c0_i32 = arith.constant 0 : i32
    %c0_i32_0 = arith.constant 0 : i32
    return %arg0, %c0_i32 : i32, i32
  }
  func.func @transform_4(%arg0: i32) -> (i32, i32) {
    %c0_i32 = arith.constant 0 : i32
    %c0_i32_0 = arith.constant 0 : i32
    %c0_i32_1 = arith.constant 0 : i32
    return %c0_i32, %c0_i32_0 : i32, i32
  }
  func.func @transform_5(%arg0: i32) -> (i32, i32) {
    %c0_i32 = arith.constant 0 : i32
    %c0_i32_0 = arith.constant 0 : i32
    %c0_i32_1 = arith.constant 0 : i32
    return %c0_i32, %c0_i32_0 : i32, i32
  }
  func.func @transform_6(%arg0: i32) -> (i32, i32) {
    %c0_i32 = arith.constant 0 : i32
    %c0_i32_0 = arith.constant 0 : i32
    %c0_i32_1 = arith.constant 0 : i32
    return %c0_i32, %c0_i32_0 : i32, i32
  }
  func.func @transform_7(%arg0: i32) -> (i32, i32) {
    %c0_i32 = arith.constant 0 : i32
    %c0_i32_0 = arith.constant 0 : i32
    return %arg0, %c0_i32 : i32, i32
  }
}

module attributes {stable_mosaic.version = 11 : i64} {
  func.func @kernel(%arg0: i32, %arg1: memref<1x20x24xbf16, #tpu.memory_space<vmem>>, %arg2: memref<9x24x8xbf16, #tpu.memory_space<vmem>>, %arg3: memref<1x8x8xf32, #tpu.memory_space<vmem>>) attributes {dimension_semantics = [#tpu.dimension_semantics<parallel>], iteration_bounds = array<i64: 2>, scalar_prefetch = 0 : i64, scratch_operands = 0 : i64, tpu.core_type = #tpu.core_type<tc>, window_params = [{transform_indices = @transform_0, window_bounds = array<i64: 1, 20, 24>}, {pipeline_mode = #tpu.pipeline_mode<synchronous>, transform_indices = @transform_1, window_bounds = array<i64: 9, 24, 8>}, {transform_indices = @transform_2, window_bounds = array<i64: 1, 8, 8>}]} {
    %cst = arith.constant 0.000000e+00 : f32
    %0 = vector.broadcast %cst : f32 to vector<8x8xf32>
    %c0 = arith.constant 0 : index
    %c0_0 = arith.constant 0 : index
    %c0_1 = arith.constant 0 : index
    %1 = vector.load %arg1[%c0, %c0_0, %c0_1] : memref<1x20x24xbf16, #tpu.memory_space<vmem>>, vector<1x8x24xbf16>
    %2 = vector.shape_cast %1 : vector<1x8x24xbf16> to vector<8x24xbf16>
    %c0_2 = arith.constant 0 : index
    %c0_3 = arith.constant 0 : index
    %c0_4 = arith.constant 0 : index
    %3 = vector.load %arg2[%c0_2, %c0_3, %c0_4] : memref<9x24x8xbf16, #tpu.memory_space<vmem>>, vector<1x24x8xbf16>
    %4 = vector.shape_cast %3 : vector<1x24x8xbf16> to vector<24x8xbf16>
    %cst_5 = arith.constant dense<0.000000e+00> : vector<8x8xf32>
    %5 = tpu.matmul %2, %4, %cst_5 {dimension_numbers = #tpu.dot_dimension_numbers<[1], [0], [0], [1], [0, 0, 1, 1], [], []>} : vector<8x24xbf16>, vector<24x8xbf16>, vector<8x8xf32> -> vector<8x8xf32>
    %6 = arith.addf %0, %5 : vector<8x8xf32>
    %c0_6 = arith.constant 0 : index
    %c1 = arith.constant 1 : index
    %c0_7 = arith.constant 0 : index
    %7 = vector.load %arg1[%c0_6, %c1, %c0_7] : memref<1x20x24xbf16, #tpu.memory_space<vmem>>, vector<1x8x24xbf16>
    %8 = vector.shape_cast %7 : vector<1x8x24xbf16> to vector<8x24xbf16>
    %c1_8 = arith.constant 1 : index
    %c0_9 = arith.constant 0 : index
    %c0_10 = arith.constant 0 : index
    %9 = vector.load %arg2[%c1_8, %c0_9, %c0_10] : memref<9x24x8xbf16, #tpu.memory_space<vmem>>, vector<1x24x8xbf16>
    %10 = vector.shape_cast %9 : vector<1x24x8xbf16> to vector<24x8xbf16>
    %cst_11 = arith.constant dense<0.000000e+00> : vector<8x8xf32>
    %11 = tpu.matmul %8, %10, %cst_11 {dimension_numbers = #tpu.dot_dimension_numbers<[1], [0], [0], [1], [0, 0, 1, 1], [], []>} : vector<8x24xbf16>, vector<24x8xbf16>, vector<8x8xf32> -> vector<8x8xf32>
    %12 = arith.addf %6, %11 : vector<8x8xf32>
    %c0_12 = arith.constant 0 : index
    %c2 = arith.constant 2 : index
    %c0_13 = arith.constant 0 : index
    %13 = vector.load %arg1[%c0_12, %c2, %c0_13] : memref<1x20x24xbf16, #tpu.memory_space<vmem>>, vector<1x8x24xbf16>
    %14 = vector.shape_cast %13 : vector<1x8x24xbf16> to vector<8x24xbf16>
    %c2_14 = arith.constant 2 : index
    %c0_15 = arith.constant 0 : index
    %c0_16 = arith.constant 0 : index
    %15 = vector.load %arg2[%c2_14, %c0_15, %c0_16] : memref<9x24x8xbf16, #tpu.memory_space<vmem>>, vector<1x24x8xbf16>
    %16 = vector.shape_cast %15 : vector<1x24x8xbf16> to vector<24x8xbf16>
    %cst_17 = arith.constant dense<0.000000e+00> : vector<8x8xf32>
    %17 = tpu.matmul %14, %16, %cst_17 {dimension_numbers = #tpu.dot_dimension_numbers<[1], [0], [0], [1], [0, 0, 1, 1], [], []>} : vector<8x24xbf16>, vector<24x8xbf16>, vector<8x8xf32> -> vector<8x8xf32>
    %18 = arith.addf %12, %17 : vector<8x8xf32>
    %c0_18 = arith.constant 0 : index
    %c4 = arith.constant 4 : index
    %c0_19 = arith.constant 0 : index
    %19 = vector.load %arg1[%c0_18, %c4, %c0_19] : memref<1x20x24xbf16, #tpu.memory_space<vmem>>, vector<1x8x24xbf16>
    %20 = vector.shape_cast %19 : vector<1x8x24xbf16> to vector<8x24xbf16>
    %c3 = arith.constant 3 : index
    %c0_20 = arith.constant 0 : index
    %c0_21 = arith.constant 0 : index
    %21 = vector.load %arg2[%c3, %c0_20, %c0_21] : memref<9x24x8xbf16, #tpu.memory_space<vmem>>, vector<1x24x8xbf16>
    %22 = vector.shape_cast %21 : vector<1x24x8xbf16> to vector<24x8xbf16>
    %cst_22 = arith.constant dense<0.000000e+00> : vector<8x8xf32>
    %23 = tpu.matmul %20, %22, %cst_22 {dimension_numbers = #tpu.dot_dimension_numbers<[1], [0], [0], [1], [0, 0, 1, 1], [], []>} : vector<8x24xbf16>, vector<24x8xbf16>, vector<8x8xf32> -> vector<8x8xf32>
    %24 = arith.addf %18, %23 : vector<8x8xf32>
    %c0_23 = arith.constant 0 : index
    %c5 = arith.constant 5 : index
    %c0_24 = arith.constant 0 : index
    %25 = vector.load %arg1[%c0_23, %c5, %c0_24] : memref<1x20x24xbf16, #tpu.memory_space<vmem>>, vector<1x8x24xbf16>
    %26 = vector.shape_cast %25 : vector<1x8x24xbf16> to vector<8x24xbf16>
    %c4_25 = arith.constant 4 : index
    %c0_26 = arith.constant 0 : index
    %c0_27 = arith.constant 0 : index
    %27 = vector.load %arg2[%c4_25, %c0_26, %c0_27] : memref<9x24x8xbf16, #tpu.memory_space<vmem>>, vector<1x24x8xbf16>
    %28 = vector.shape_cast %27 : vector<1x24x8xbf16> to vector<24x8xbf16>
    %cst_28 = arith.constant dense<0.000000e+00> : vector<8x8xf32>
    %29 = tpu.matmul %26, %28, %cst_28 {dimension_numbers = #tpu.dot_dimension_numbers<[1], [0], [0], [1], [0, 0, 1, 1], [], []>} : vector<8x24xbf16>, vector<24x8xbf16>, vector<8x8xf32> -> vector<8x8xf32>
    %30 = arith.addf %24, %29 : vector<8x8xf32>
    %c0_29 = arith.constant 0 : index
    %c6 = arith.constant 6 : index
    %c0_30 = arith.constant 0 : index
    %31 = vector.load %arg1[%c0_29, %c6, %c0_30] : memref<1x20x24xbf16, #tpu.memory_space<vmem>>, vector<1x8x24xbf16>
    %32 = vector.shape_cast %31 : vector<1x8x24xbf16> to vector<8x24xbf16>
    %c5_31 = arith.constant 5 : index
    %c0_32 = arith.constant 0 : index
    %c0_33 = arith.constant 0 : index
    %33 = vector.load %arg2[%c5_31, %c0_32, %c0_33] : memref<9x24x8xbf16, #tpu.memory_space<vmem>>, vector<1x24x8xbf16>
    %34 = vector.shape_cast %33 : vector<1x24x8xbf16> to vector<24x8xbf16>
    %cst_34 = arith.constant dense<0.000000e+00> : vector<8x8xf32>
    %35 = tpu.matmul %32, %34, %cst_34 {dimension_numbers = #tpu.dot_dimension_numbers<[1], [0], [0], [1], [0, 0, 1, 1], [], []>} : vector<8x24xbf16>, vector<24x8xbf16>, vector<8x8xf32> -> vector<8x8xf32>
    %36 = arith.addf %30, %35 : vector<8x8xf32>
    %c0_35 = arith.constant 0 : index
    %c8 = arith.constant 8 : index
    %c0_36 = arith.constant 0 : index
    %37 = vector.load %arg1[%c0_35, %c8, %c0_36] : memref<1x20x24xbf16, #tpu.memory_space<vmem>>, vector<1x8x24xbf16>
    %38 = vector.shape_cast %37 : vector<1x8x24xbf16> to vector<8x24xbf16>
    %c6_37 = arith.constant 6 : index
    %c0_38 = arith.constant 0 : index
    %c0_39 = arith.constant 0 : index
    %39 = vector.load %arg2[%c6_37, %c0_38, %c0_39] : memref<9x24x8xbf16, #tpu.memory_space<vmem>>, vector<1x24x8xbf16>
    %40 = vector.shape_cast %39 : vector<1x24x8xbf16> to vector<24x8xbf16>
    %cst_40 = arith.constant dense<0.000000e+00> : vector<8x8xf32>
    %41 = tpu.matmul %38, %40, %cst_40 {dimension_numbers = #tpu.dot_dimension_numbers<[1], [0], [0], [1], [0, 0, 1, 1], [], []>} : vector<8x24xbf16>, vector<24x8xbf16>, vector<8x8xf32> -> vector<8x8xf32>
    %42 = arith.addf %36, %41 : vector<8x8xf32>
    %c0_41 = arith.constant 0 : index
    %c9 = arith.constant 9 : index
    %c0_42 = arith.constant 0 : index
    %43 = vector.load %arg1[%c0_41, %c9, %c0_42] : memref<1x20x24xbf16, #tpu.memory_space<vmem>>, vector<1x8x24xbf16>
    %44 = vector.shape_cast %43 : vector<1x8x24xbf16> to vector<8x24xbf16>
    %c7 = arith.constant 7 : index
    %c0_43 = arith.constant 0 : index
    %c0_44 = arith.constant 0 : index
    %45 = vector.load %arg2[%c7, %c0_43, %c0_44] : memref<9x24x8xbf16, #tpu.memory_space<vmem>>, vector<1x24x8xbf16>
    %46 = vector.shape_cast %45 : vector<1x24x8xbf16> to vector<24x8xbf16>
    %cst_45 = arith.constant dense<0.000000e+00> : vector<8x8xf32>
    %47 = tpu.matmul %44, %46, %cst_45 {dimension_numbers = #tpu.dot_dimension_numbers<[1], [0], [0], [1], [0, 0, 1, 1], [], []>} : vector<8x24xbf16>, vector<24x8xbf16>, vector<8x8xf32> -> vector<8x8xf32>
    %48 = arith.addf %42, %47 : vector<8x8xf32>
    %c0_46 = arith.constant 0 : index
    %c10 = arith.constant 10 : index
    %c0_47 = arith.constant 0 : index
    %49 = vector.load %arg1[%c0_46, %c10, %c0_47] : memref<1x20x24xbf16, #tpu.memory_space<vmem>>, vector<1x8x24xbf16>
    %50 = vector.shape_cast %49 : vector<1x8x24xbf16> to vector<8x24xbf16>
    %c8_48 = arith.constant 8 : index
    %c0_49 = arith.constant 0 : index
    %c0_50 = arith.constant 0 : index
    %51 = vector.load %arg2[%c8_48, %c0_49, %c0_50] : memref<9x24x8xbf16, #tpu.memory_space<vmem>>, vector<1x24x8xbf16>
    %52 = vector.shape_cast %51 : vector<1x24x8xbf16> to vector<24x8xbf16>
    %cst_51 = arith.constant dense<0.000000e+00> : vector<8x8xf32>
    %53 = tpu.matmul %50, %52, %cst_51 {dimension_numbers = #tpu.dot_dimension_numbers<[1], [0], [0], [1], [0, 0, 1, 1], [], []>} : vector<8x24xbf16>, vector<24x8xbf16>, vector<8x8xf32> -> vector<8x8xf32>
    %54 = arith.addf %48, %53 : vector<8x8xf32>
    %c0_52 = arith.constant 0 : index
    %c0_53 = arith.constant 0 : index
    %c0_54 = arith.constant 0 : index
    %55 = vector.load %arg3[%c0_52, %c0_53, %c0_54] : memref<1x8x8xf32, #tpu.memory_space<vmem>>, vector<1x8x8xf32>
    %56 = vector.shape_cast %55 : vector<1x8x8xf32> to vector<8x8xf32>
    %57 = vector.shape_cast %54 : vector<8x8xf32> to vector<1x8x8xf32>
    tpu.vector_store %arg3[%c0_52, %c0_53, %c0_54], %57 {strides = array<i32>} : memref<1x8x8xf32, #tpu.memory_space<vmem>>, vector<1x8x8xf32>,
    return
  }
  func.func @transform_0(%arg0: i32) -> (i32, i32, i32) {
    %c0_i32 = arith.constant 0 : i32
    %c0_i32_0 = arith.constant 0 : i32
    %c0_i32_1 = arith.constant 0 : i32
    return %arg0, %c0_i32, %c0_i32_0 : i32, i32, i32
  }
  func.func @transform_1(%arg0: i32) -> (i32, i32, i32) {
    %c0_i32 = arith.constant 0 : i32
    %c0_i32_0 = arith.constant 0 : i32
    %c0_i32_1 = arith.constant 0 : i32
    %c0_i32_2 = arith.constant 0 : i32
    return %c0_i32, %c0_i32_0, %c0_i32_1 : i32, i32, i32
  }
  func.func @transform_2(%arg0: i32) -> (i32, i32, i32) {
    %c0_i32 = arith.constant 0 : i32
    %c0_i32_0 = arith.constant 0 : i32
    %c0_i32_1 = arith.constant 0 : i32
    return %arg0, %c0_i32, %c0_i32_0 : i32, i32, i32
  }
}

module attributes {stable_mosaic.version = 11 : i64} {
  func.func @_bn_relu_mm_bn_relu_kernel(%arg0: i32, %arg1: memref<8x24xf32, #tpu.memory_space<vmem>>, %arg2: memref<1x24xf32, #tpu.memory_space<vmem>>, %arg3: memref<1x24xf32, #tpu.memory_space<vmem>>, %arg4: memref<24x24xbf16, #tpu.memory_space<vmem>>, %arg5: memref<1x24xf32, #tpu.memory_space<vmem>>, %arg6: memref<1x24xf32, #tpu.memory_space<vmem>>, %arg7: memref<8x24xf32, #tpu.memory_space<vmem>>) attributes {dimension_semantics = [#tpu.dimension_semantics<parallel>], iteration_bounds = array<i64: 1>, scalar_prefetch = 0 : i64, scratch_operands = 0 : i64, tpu.core_type = #tpu.core_type<tc>, window_params = [{transform_indices = @transform_0, window_bounds = array<i64: 8, 24>}, {pipeline_mode = #tpu.pipeline_mode<synchronous>, transform_indices = @transform_1, window_bounds = array<i64: 1, 24>}, {pipeline_mode = #tpu.pipeline_mode<synchronous>, transform_indices = @transform_2, window_bounds = array<i64: 1, 24>}, {pipeline_mode = #tpu.pipeline_mode<synchronous>, transform_indices = @transform_3, window_bounds = array<i64: 24, 24>}, {pipeline_mode = #tpu.pipeline_mode<synchronous>, transform_indices = @transform_4, window_bounds = array<i64: 1, 24>}, {pipeline_mode = #tpu.pipeline_mode<synchronous>, transform_indices = @transform_5, window_bounds = array<i64: 1, 24>}, {transform_indices = @transform_6, window_bounds = array<i64: 8, 24>}]} {
    %c0 = arith.constant 0 : index
    %c0_0 = arith.constant 0 : index
    %0 = vector.load %arg1[%c0, %c0_0] : memref<8x24xf32, #tpu.memory_space<vmem>>, vector<8x24xf32>
    %c0_1 = arith.constant 0 : index
    %c0_2 = arith.constant 0 : index
    %1 = vector.load %arg2[%c0_1, %c0_2] : memref<1x24xf32, #tpu.memory_space<vmem>>, vector<1x24xf32>
    %2 = vector.broadcast %1 : vector<1x24xf32> to vector<8x24xf32>
    %3 = arith.mulf %0, %2 : vector<8x24xf32>
    %c0_3 = arith.constant 0 : index
    %c0_4 = arith.constant 0 : index
    %4 = vector.load %arg3[%c0_3, %c0_4] : memref<1x24xf32, #tpu.memory_space<vmem>>, vector<1x24xf32>
    %5 = vector.broadcast %4 : vector<1x24xf32> to vector<8x24xf32>
    %6 = arith.addf %3, %5 : vector<8x24xf32>
    %cst = arith.constant 0.000000e+00 : f32
    %7 = vector.broadcast %cst : f32 to vector<8x24xf32>
    %8 = arith.maximumf %6, %7 : vector<8x24xf32>
    %9 = arith.truncf %8 : vector<8x24xf32> to vector<8x24xbf16>
    %c0_5 = arith.constant 0 : index
    %c0_6 = arith.constant 0 : index
    %10 = vector.load %arg4[%c0_5, %c0_6] : memref<24x24xbf16, #tpu.memory_space<vmem>>, vector<24x24xbf16>
    %cst_7 = arith.constant dense<0.000000e+00> : vector<8x24xf32>
    %11 = tpu.matmul %9, %10, %cst_7 {dimension_numbers = #tpu.dot_dimension_numbers<[1], [0], [0], [1], [0, 0, 1, 1], [], []>} : vector<8x24xbf16>, vector<24x24xbf16>, vector<8x24xf32> -> vector<8x24xf32>
    %c0_8 = arith.constant 0 : index
    %c0_9 = arith.constant 0 : index
    %12 = vector.load %arg5[%c0_8, %c0_9] : memref<1x24xf32, #tpu.memory_space<vmem>>, vector<1x24xf32>
    %13 = vector.broadcast %12 : vector<1x24xf32> to vector<8x24xf32>
    %14 = arith.mulf %11, %13 : vector<8x24xf32>
    %c0_10 = arith.constant 0 : index
    %c0_11 = arith.constant 0 : index
    %15 = vector.load %arg6[%c0_10, %c0_11] : memref<1x24xf32, #tpu.memory_space<vmem>>, vector<1x24xf32>
    %16 = vector.broadcast %15 : vector<1x24xf32> to vector<8x24xf32>
    %17 = arith.addf %14, %16 : vector<8x24xf32>
    %cst_12 = arith.constant 0.000000e+00 : f32
    %18 = vector.broadcast %cst_12 : f32 to vector<8x24xf32>
    %19 = arith.maximumf %17, %18 : vector<8x24xf32>
    %c0_13 = arith.constant 0 : index
    %c0_14 = arith.constant 0 : index
    %20 = vector.load %arg7[%c0_13, %c0_14] : memref<8x24xf32, #tpu.memory_space<vmem>>, vector<8x24xf32>
    tpu.vector_store %arg7[%c0_13, %c0_14], %19 {strides = array<i32>} : memref<8x24xf32, #tpu.memory_space<vmem>>, vector<8x24xf32>,
    return
  }
  func.func @transform_0(%arg0: i32) -> (i32, i32) {
    %c0_i32 = arith.constant 0 : i32
    %c0_i32_0 = arith.constant 0 : i32
    return %arg0, %c0_i32 : i32, i32
  }
  func.func @transform_1(%arg0: i32) -> (i32, i32) {
    %c0_i32 = arith.constant 0 : i32
    %c0_i32_0 = arith.constant 0 : i32
    %c0_i32_1 = arith.constant 0 : i32
    return %c0_i32, %c0_i32_0 : i32, i32
  }
  func.func @transform_2(%arg0: i32) -> (i32, i32) {
    %c0_i32 = arith.constant 0 : i32
    %c0_i32_0 = arith.constant 0 : i32
    %c0_i32_1 = arith.constant 0 : i32
    return %c0_i32, %c0_i32_0 : i32, i32
  }
  func.func @transform_3(%arg0: i32) -> (i32, i32) {
    %c0_i32 = arith.constant 0 : i32
    %c0_i32_0 = arith.constant 0 : i32
    %c0_i32_1 = arith.constant 0 : i32
    return %c0_i32, %c0_i32_0 : i32, i32
  }
  func.func @transform_4(%arg0: i32) -> (i32, i32) {
    %c0_i32 = arith.constant 0 : i32
    %c0_i32_0 = arith.constant 0 : i32
    %c0_i32_1 = arith.constant 0 : i32
    return %c0_i32, %c0_i32_0 : i32, i32
  }
  func.func @transform_5(%arg0: i32) -> (i32, i32) {
    %c0_i32 = arith.constant 0 : i32
    %c0_i32_0 = arith.constant 0 : i32
    %c0_i32_1 = arith.constant 0 : i32
    return %c0_i32, %c0_i32_0 : i32, i32
  }
  func.func @transform_6(%arg0: i32) -> (i32, i32) {
    %c0_i32 = arith.constant 0 : i32
    %c0_i32_0 = arith.constant 0 : i32
    return %arg0, %c0_i32 : i32, i32
  }
}

module attributes {stable_mosaic.version = 11 : i64} {
  func.func @_bn_relu_mm_kernel(%arg0: i32, %arg1: memref<8x32xf32, #tpu.memory_space<vmem>>, %arg2: memref<1x32xf32, #tpu.memory_space<vmem>>, %arg3: memref<1x32xf32, #tpu.memory_space<vmem>>, %arg4: memref<32x16xbf16, #tpu.memory_space<vmem>>, %arg5: memref<8x16xf32, #tpu.memory_space<vmem>>) attributes {dimension_semantics = [#tpu.dimension_semantics<parallel>], iteration_bounds = array<i64: 1>, scalar_prefetch = 0 : i64, scratch_operands = 0 : i64, tpu.core_type = #tpu.core_type<tc>, window_params = [{transform_indices = @transform_0, window_bounds = array<i64: 8, 32>}, {pipeline_mode = #tpu.pipeline_mode<synchronous>, transform_indices = @transform_1, window_bounds = array<i64: 1, 32>}, {pipeline_mode = #tpu.pipeline_mode<synchronous>, transform_indices = @transform_2, window_bounds = array<i64: 1, 32>}, {pipeline_mode = #tpu.pipeline_mode<synchronous>, transform_indices = @transform_3, window_bounds = array<i64: 32, 16>}, {transform_indices = @transform_4, window_bounds = array<i64: 8, 16>}]} {
    %c0 = arith.constant 0 : index
    %c0_0 = arith.constant 0 : index
    %0 = vector.load %arg1[%c0, %c0_0] : memref<8x32xf32, #tpu.memory_space<vmem>>, vector<8x32xf32>
    %c0_1 = arith.constant 0 : index
    %c0_2 = arith.constant 0 : index
    %1 = vector.load %arg2[%c0_1, %c0_2] : memref<1x32xf32, #tpu.memory_space<vmem>>, vector<1x32xf32>
    %2 = vector.broadcast %1 : vector<1x32xf32> to vector<8x32xf32>
    %3 = arith.mulf %0, %2 : vector<8x32xf32>
    %c0_3 = arith.constant 0 : index
    %c0_4 = arith.constant 0 : index
    %4 = vector.load %arg3[%c0_3, %c0_4] : memref<1x32xf32, #tpu.memory_space<vmem>>, vector<1x32xf32>
    %5 = vector.broadcast %4 : vector<1x32xf32> to vector<8x32xf32>
    %6 = arith.addf %3, %5 : vector<8x32xf32>
    %cst = arith.constant 0.000000e+00 : f32
    %7 = vector.broadcast %cst : f32 to vector<8x32xf32>
    %8 = arith.maximumf %6, %7 : vector<8x32xf32>
    %9 = arith.truncf %8 : vector<8x32xf32> to vector<8x32xbf16>
    %c0_5 = arith.constant 0 : index
    %c0_6 = arith.constant 0 : index
    %10 = vector.load %arg4[%c0_5, %c0_6] : memref<32x16xbf16, #tpu.memory_space<vmem>>, vector<32x16xbf16>
    %cst_7 = arith.constant dense<0.000000e+00> : vector<8x16xf32>
    %11 = tpu.matmul %9, %10, %cst_7 {dimension_numbers = #tpu.dot_dimension_numbers<[1], [0], [0], [1], [0, 0, 1, 1], [], []>} : vector<8x32xbf16>, vector<32x16xbf16>, vector<8x16xf32> -> vector<8x16xf32>
    %c0_8 = arith.constant 0 : index
    %c0_9 = arith.constant 0 : index
    %12 = vector.load %arg5[%c0_8, %c0_9] : memref<8x16xf32, #tpu.memory_space<vmem>>, vector<8x16xf32>
    tpu.vector_store %arg5[%c0_8, %c0_9], %11 {strides = array<i32>} : memref<8x16xf32, #tpu.memory_space<vmem>>, vector<8x16xf32>,
    return
  }
  func.func @transform_0(%arg0: i32) -> (i32, i32) {
    %c0_i32 = arith.constant 0 : i32
    %c0_i32_0 = arith.constant 0 : i32
    return %arg0, %c0_i32 : i32, i32
  }
  func.func @transform_1(%arg0: i32) -> (i32, i32) {
    %c0_i32 = arith.constant 0 : i32
    %c0_i32_0 = arith.constant 0 : i32
    %c0_i32_1 = arith.constant 0 : i32
    return %c0_i32, %c0_i32_0 : i32, i32
  }
  func.func @transform_2(%arg0: i32) -> (i32, i32) {
    %c0_i32 = arith.constant 0 : i32
    %c0_i32_0 = arith.constant 0 : i32
    %c0_i32_1 = arith.constant 0 : i32
    return %c0_i32, %c0_i32_0 : i32, i32
  }
  func.func @transform_3(%arg0: i32) -> (i32, i32) {
    %c0_i32 = arith.constant 0 : i32
    %c0_i32_0 = arith.constant 0 : i32
    %c0_i32_1 = arith.constant 0 : i32
    return %c0_i32, %c0_i32_0 : i32, i32
  }
  func.func @transform_4(%arg0: i32) -> (i32, i32) {
    %c0_i32 = arith.constant 0 : i32
    %c0_i32_0 = arith.constant 0 : i32
    return %arg0, %c0_i32 : i32, i32
  }
}

</mosaic_0001>

<bundles_post_ra>
// kernel: deepcnn300_forward.13
= control target key start
LH: loop header
LB: loop body
LE: loop exit
PB: predicated region body
PF: predicated region fallthrough
CT: control target
= control target key end

     0   :  { %vm45_vm0 = vcmask 130048   ;;  %s143_s0 = inlined_call_operand.vmem [shape: f32[32,16], index: 0, kind: input, shape index: {}]   ;;  %s144_s1 = inlined_call_operand.vmem [shape: f32[32,16], index: 1, kind: input, shape index: {}]   ;;  %s145_s2 = inlined_call_operand.vmem [shape: f32[32,16], index: 2, kind: input, shape index: {}]   ;;  %s146_s3 = inlined_call_operand.vmem [shape: f32[32,16], index: 3, kind: input, shape index: {}]   ;;  %s147_s4 = inlined_call_operand.vmem [shape: f32[32,16], index: 4, kind: output, shape index: {}]  }
   0x1   :  { %v17_v0 = vld [vmem:[%s143_s0] sm:$0xff]  ;;  %v18_v5 = vld [vmem:[%s143_s0 + $0x8] sm:$0xff]  ;;  %v19_v11 = vld [vmem:[%s143_s0 + $0x10] sm:$0xff] }
   0x2   :  { %v21_v1 = vld [vmem:[%s144_s1] sm:$0xff]  ;;  %v22_v6 = vld [vmem:[%s144_s1 + $0x8] sm:$0xff]  ;;  %v23_v13 = vld [vmem:[%s144_s1 + $0x10] sm:$0xff] }
   0x3   :  { %v29_v2 = vld [vmem:[%s145_s2] sm:$0xff]  ;;  %v25_v3 = vmax.f32 %v17_v0, %v21_v1  ;;  %v26_v8 = vmax.f32 %v18_v5, %v22_v6  ;;  %v30_v9 = vld [vmem:[%s145_s2 + $0x8] sm:$0xff]  ;;  %v31_v14 = vld [vmem:[%s145_s2 + $0x10] sm:$0xff]  ;;  %v27_v17 = vmax.f32 %v19_v11, %v23_v13 }
   0x4   :  { %v33_v4 = vld [vmem:[%s146_s3] sm:$0xff]  ;;  %v34_v10 = vld [vmem:[%s146_s3 + $0x8] sm:$0xff]  ;;  %v35_v15 = vld [vmem:[%s146_s3 + $0x10] sm:$0xff] }
   0x5   :  { %v37_v7 = vmax.f32 %v29_v2, %v33_v4  ;;  %v38_v12 = vmax.f32 %v30_v9, %v34_v10  ;;  %v39_v18 = vmax.f32 %v31_v14, %v35_v15  ;;  %v20_v19 = vld [vmem:[%s143_s0 + $0x18] sm:$0xff] }
   0x6   :  { %v24_v20 = vld [vmem:[%s144_s1 + $0x18] sm:$0xff] }
   0x7   :  { %v41_v16 = vmax.f32 %v25_v3, %v37_v7  ;;  %v32_v21 = vld [vmem:[%s145_s2 + $0x18] sm:$0xff]  ;;  %v42_v22 = vmax.f32 %v26_v8, %v38_v12  ;;  %v28_v23 = vmax.f32 %v20_v19, %v24_v20  ;;  %v43_v25 = vmax.f32 %v27_v17, %v39_v18 }
   0x8   :  { %v36_v24 = vld [vmem:[%s146_s3 + $0x18] sm:$0xff] }
   0x9   :  { %46 = vst.msk [vmem:[%s147_s4] sm:$0xff] %vm45_vm0, %v41_v16  ;;  %v40_v26 = vmax.f32 %v32_v21, %v36_v24  ;;  %47 = vst.msk [vmem:[%s147_s4 + $0x8] sm:$0xff] %vm45_vm0, %v42_v22 }
   0xa   :  { %48 = vst.msk [vmem:[%s147_s4 + $0x10] sm:$0xff] %vm45_vm0, %v43_v25 }
   0xb   :  { %v44_v27 = vmax.f32 %v28_v23, %v40_v26 }
   0xd   :  { %49 = vst.msk [vmem:[%s147_s4 + $0x18] sm:$0xff] %vm45_vm0, %v44_v27 }

// kernel: deepcnn300_forward.14
= control target key start
LH: loop header
LB: loop body
LE: loop exit
PB: predicated region body
PF: predicated region fallthrough
CT: control target
= control target key end

     0   :  { %vm64_vm0 = vcmask 130048   ;;  %vm146_vm1 = vcmask 195584   ;;  %s246_s3 = inlined_call_operand.vmem [shape: bf16[16,24], index: 3, kind: input, shape index: {}]   ;;  %s247_s0 = inlined_call_operand.vmem [shape: f32[32,16], index: 0, kind: input, shape index: {}]   ;;  %s248_s1 = inlined_call_operand.vmem [shape: f32[1,16], index: 1, kind: input, shape index: {}]   ;;  %s249_s2 = inlined_call_operand.vmem [shape: f32[1,16], index: 2, kind: input, shape index: {}]   ;;  %s250_s4 = inlined_call_operand.vmem [shape: f32[1,24], index: 4, kind: input, shape index: {}]   ;;  %s251_s5 = inlined_call_operand.vmem [shape: f32[1,24], index: 5, kind: input, shape index: {}]   ;;  %s252_s6 = inlined_call_operand.vmem [shape: f32[32,24], index: 6, kind: output, shape index: {}]  }
   0x1   :  { %v171_v0 = vld [vmem:[%s246_s3] sm:$0xff]   ;;  %v25_v2 = vld [vmem:[%s247_s0 + $0x8] sm:$0xff]  ;;  %v26_v7 = vld [vmem:[%s247_s0 + $0x10] sm:$0xff] }
   0x2   :  { %v24_v1 = vld [vmem:[%s247_s0] sm:$0xff]  ;;  %165 = vmatprep.subr.bf16.mxu0 %v171_v0  ;;  %v27_v8 = vld [vmem:[%s247_s0 + $0x18] sm:$0xff] }
   0x3   :  { %v155_v3 = vld [vmem:[%s248_s1] ss:$0 sm:$0xff]  ;;  %166 = vmatpush3.bf16.msra.mxu0 %v171_v0 }
   0x4   :  { %v35_v4 = vmul.f32 %v155_v3, %v24_v1  ;;  %v36_v5 = vmul.f32 %v155_v3, %v25_v2  ;;  %v156_v6 = vld [vmem:[%s249_s2] ss:$0 sm:$0xff]  ;;  %v37_v9 = vmul.f32 %v155_v3, %v26_v7  ;;  %v38_v10 = vmul.f32 %v155_v3, %v27_v8 }
   0x5   :  { %v160_v21 = vld [vmem:[%s250_s4] ss:$0 sm:$0xff] }
   0x6   :  { %v46_v11 = vadd.f32 %v156_v6, %v35_v4  ;;  %v47_v12 = vadd.f32 %v156_v6, %v36_v5  ;;  %v48_v13 = vadd.f32 %v156_v6, %v37_v9  ;;  %v49_v14 = vadd.f32 %v156_v6, %v38_v10  ;;  %v161_v23 = vld [vmem:[%s251_s5] ss:$0 sm:$0xff] }
   0x8   :  { %v50_v15 = vmax.f32 %v46_v11, 0.0  ;;  %v51_v16 = vmax.f32 %v47_v12, 0.0  ;;  %v52_v17 = vmax.f32 %v48_v13, 0.0  ;;  %v53_v18 = vmax.f32 %v49_v14, 0.0 }
   0xa   :  { %v54_v19 = vpack.c.bf16 %v51_v16, %v50_v15  ;;  %v55_v20 = vpack.c.bf16 %v53_v18, %v52_v17 }
   0xc   :  { %167 = vmatprep.mubr.msk.bf16.mxu0 %vm64_vm0, %v54_v19 }
   0xd   :  { %168 = vmatmul.mubr.msk.bf16.vlgmr.msra.gmra.mrb[0].mxu0 %vm64_vm0, %v55_v20 }
  0xe0   :  { %v169_v22 = vpop.f32.mrb[0].mxu0 }
  0xe1   :  { %v129_v24 = vmul.f32 %v169_v22, %v160_v21  ;;  %v105_v25 = vpop.f32.mrb[1].mxu0 }
  0xe2   :  { %v127_v26 = vmul.f32 %v160_v21, %v105_v25  ;;  %v170_v27 = vpop.f32.mrb[2].mxu0 }
  0xe3   :  { %v140_v28 = vadd.f32 %v161_v23, %v129_v24  ;;  %v130_v29 = vmul.f32 %v170_v27, %v160_v21  ;;  %v108_v30 = vpop.f32.mrb[3].mxu0 }
  0xe4   :  { %v138_v31 = vadd.f32 %v161_v23, %v127_v26  ;;  %v128_v32 = vmul.f32 %v160_v21, %v108_v30 }
  0xe5   :  { %v144_v33 = vmax.f32 %v140_v28, 0.0  ;;  %v141_v34 = vadd.f32 %v161_v23, %v130_v29 }
  0xe6   :  { %v142_v35 = vmax.f32 %v138_v31, 0.0  ;;  %v139_v36 = vadd.f32 %v161_v23, %v128_v32 }
  0xe7   :  { %149 = vst.msk [vmem:[%s252_s6 + $0x10] sm:$0xff] %vm146_vm1, %v144_v33  ;;  %v145_v37 = vmax.f32 %v141_v34, 0.0 }
  0xe8   :  { %147 = vst.msk [vmem:[%s252_s6] sm:$0xff] %vm146_vm1, %v142_v35  ;;  %v143_v38 = vmax.f32 %v139_v36, 0.0 }
  0xe9   :  { %150 = vst.msk [vmem:[%s252_s6 + $0x18] sm:$0xff] %vm146_vm1, %v145_v37 }
  0xea   :  { %148 = vst.msk [vmem:[%s252_s6 + $0x8] sm:$0xff] %vm146_vm1, %v143_v38 }

// kernel: deepcnn300_forward.12
= control target key start
LH: loop header
LB: loop body
LE: loop exit
PB: predicated region body
PF: predicated region fallthrough
CT: control target
= control target key end

     0   :  { %v518_v0 = vmov 0   ;;  %vm206_vm0 = vcmask 556032   ;;  %vm231_vm1 = vcmask 1041408   ;;  %vm394_vm2 = vcmask 130048   ;;  %s771_s1 = inlined_call_operand.vmem [shape: bf16[196,16], index: 1, kind: input, shape index: {}]   ;;  %s772_s0 = inlined_call_operand.vmem [shape: bf16[128,196], index: 0, kind: input, shape index: {}]   ;;  %s773_s2 = inlined_call_operand.vmem [shape: f32[1,16], index: 2, kind: input, shape index: {}]   ;;  %s774_s3 = inlined_call_operand.vmem [shape: f32[1,16], index: 3, kind: input, shape index: {}]   ;;  %s775_s4 = inlined_call_operand.vmem [shape: f32[128,16], index: 4, kind: output, shape index: {}]  }
   0x1   :  { %235 = vmatprep.subr.bf16.mxu0 %v518_v0  ;;  %454 = vmatprep.subr.bf16.mxu1 %v518_v0  ;;  %v481_v1 = vld [vmem:[%s771_s1] sm:$0xff]   ;;  %v482_v2 = vld [vmem:[%s771_s1 + $0x8] sm:$0xff]   ;;  %v483_v3 = vld [vmem:[%s771_s1 + $0x10] sm:$0xff]  }
   0x2   :  { %236 = vmatpush1.bf16.msra.mxu0 %v481_v1  ;;  %467 = vmatpush1.bf16.msra.mxu1 %v481_v1  ;;  %v484_v4 = vld [vmem:[%s771_s1 + $0x18] sm:$0xff]   ;;  %v496_v5 = vld [vmem:[%s772_s0 + $0x4] ss:$8 sps:$4 sm:$0xff]   ;;  %v487_v9 = vld [vmem:[%s771_s1 + $0x30] sm:$0xff]  }
   0x3   :  { %237 = vmatprep.subr.bf16.mxu0 %v518_v0  ;;  %455 = vmatprep.subr.bf16.mxu1 %v518_v0  ;;  %v485_v6 = vld [vmem:[%s771_s1 + $0x20] sm:$0xff]   ;;  %v486_v8 = vld [vmem:[%s771_s1 + $0x28] sm:$0xff]   ;;  %v488_v10 = vld [vmem:[%s771_s1 + $0x38] sm:$0xff]  }
   0x4   :  { %v499_v7 = vld [vmem:[%s772_s0 + $0x44] ss:$8 sps:$4 sm:$0xff]   ;;  %444 = vmatprep.mubr.msk.bf16.mxu0 %vm206_vm0, %v496_v5  ;;  %v491_v13 = vld [vmem:[%s771_s1 + $0x50] sm:$0xff]   ;;  %v492_v14 = vld [vmem:[%s771_s1 + $0x58] sm:$0xff]  }
   0x5   :  { %448 = vmatprep.mubr.msk.bf16.mxu1 %vm206_vm0, %v499_v7  ;;  %v489_v11 = vld [vmem:[%s771_s1 + $0x40] sm:$0xff]   ;;  %v490_v12 = vld [vmem:[%s771_s1 + $0x48] sm:$0xff]   ;;  %v500_v19 = vld [vmem:[%s772_s0 + $0x14] ss:$8 sps:$4 sm:$0xff]  }
   0x6   :  { %238 = vmatpush1.bf16.msra.mxu0 %v482_v2  ;;  %468 = vmatpush1.bf16.msra.mxu1 %v482_v2  ;;  %v493_v15 = vld [vmem:[%s771_s1 + $0x60] ss:$0 sps:$4 sm:$0x33]   ;;  %v502_v20 = vld [vmem:[%s772_s0 + $0x54] ss:$8 sps:$4 sm:$0xff]  }
   0x7   :  { %239 = vmatprep.subr.bf16.mxu0 %v518_v0  ;;  %456 = vmatprep.subr.bf16.mxu1 %v518_v0  ;;  %v233_v16 = vsel %vm231_vm1, %v493_v15, 0  ;;  %v494_v17 = vld [vmem:[%s772_s0] ss:$8 sps:$4 sm:$0xff]   ;;  %v504_v21 = vld [vmem:[%s772_s0 + $0x10] ss:$8 sps:$4 sm:$0xff]  }
   0x8   :  { %v497_v18 = vld [vmem:[%s772_s0 + $0x40] ss:$8 sps:$4 sm:$0xff]   ;;  %v505_v22 = vld [vmem:[%s772_s0 + $0x50] ss:$8 sps:$4 sm:$0xff]   ;;  %v506_v23 = vld [vmem:[%s772_s0 + $0x24] ss:$8 sps:$4 sm:$0xff]  }
   0x9   :  { %v508_v24 = vld [vmem:[%s772_s0 + $0x64] ss:$8 sps:$4 sm:$0xff]   ;;  %v510_v25 = vld [vmem:[%s772_s0 + $0x20] ss:$8 sps:$4 sm:$0xff]   ;;  %v512_v27 = vld [vmem:[%s772_s0 + $0x34] ss:$8 sps:$4 sm:$0xff]  }
   0xa   :  { %240 = vmatpush1.bf16.msra.mxu0 %v483_v3  ;;  %469 = vmatpush1.bf16.msra.mxu1 %v483_v3  ;;  %v511_v26 = vld [vmem:[%s772_s0 + $0x60] ss:$8 sps:$4 sm:$0xff]   ;;  %v514_v28 = vld [vmem:[%s772_s0 + $0x74] ss:$8 sps:$4 sm:$0xff]   ;;  %v516_v29 = vld [vmem:[%s772_s0 + $0x30] ss:$8 sps:$4 sm:$0xff]  }
   0xb   :  { %241 = vmatprep.subr.bf16.mxu0 %v518_v0  ;;  %457 = vmatprep.subr.bf16.mxu1 %v518_v0  ;;  %v517_v30 = vld [vmem:[%s772_s0 + $0x70] ss:$8 sps:$4 sm:$0xff]   ;;  %v668_v31 = vld [vmem:[%s773_s2] ss:$0 sm:$0xff] }
   0xc   :  { %v673_v33 = vld [vmem:[%s774_s3] ss:$0 sm:$0xff] }
   0xe   :  { %242 = vmatpush1.bf16.msra.mxu0 %v484_v4  ;;  %470 = vmatpush1.bf16.msra.mxu1 %v484_v4 }
   0xf   :  { %243 = vmatprep.subr.bf16.mxu0 %v518_v0  ;;  %458 = vmatprep.subr.bf16.mxu1 %v518_v0 }
  0x12   :  { %244 = vmatpush1.bf16.msra.mxu0 %v485_v6  ;;  %471 = vmatpush1.bf16.msra.mxu1 %v485_v6 }
  0x13   :  { %245 = vmatprep.subr.bf16.mxu0 %v518_v0  ;;  %459 = vmatprep.subr.bf16.mxu1 %v518_v0 }
  0x16   :  { %246 = vmatpush1.bf16.msra.mxu0 %v486_v8  ;;  %472 = vmatpush1.bf16.msra.mxu1 %v486_v8 }
  0x17   :  { %247 = vmatprep.subr.bf16.mxu0 %v518_v0  ;;  %460 = vmatprep.subr.bf16.mxu1 %v518_v0 }
  0x1a   :  { %248 = vmatpush1.bf16.msra.mxu0 %v487_v9  ;;  %473 = vmatpush1.bf16.msra.mxu1 %v487_v9 }
  0x1b   :  { %249 = vmatprep.subr.bf16.mxu0 %v518_v0  ;;  %461 = vmatprep.subr.bf16.mxu1 %v518_v0 }
  0x1e   :  { %250 = vmatpush1.bf16.msra.mxu0 %v488_v10  ;;  %474 = vmatpush1.bf16.msra.mxu1 %v488_v10 }
  0x1f   :  { %251 = vmatprep.subr.bf16.mxu0 %v518_v0  ;;  %462 = vmatprep.subr.bf16.mxu1 %v518_v0 }
  0x22   :  { %252 = vmatpush1.bf16.msra.mxu0 %v489_v11  ;;  %475 = vmatpush1.bf16.msra.mxu1 %v489_v11 }
  0x23   :  { %253 = vmatprep.subr.bf16.mxu0 %v518_v0  ;;  %463 = vmatprep.subr.bf16.mxu1 %v518_v0 }
  0x26   :  { %254 = vmatpush1.bf16.msra.mxu0 %v490_v12  ;;  %476 = vmatpush1.bf16.msra.mxu1 %v490_v12 }
  0x27   :  { %255 = vmatprep.subr.bf16.mxu0 %v518_v0  ;;  %464 = vmatprep.subr.bf16.mxu1 %v518_v0 }
  0x2a   :  { %256 = vmatpush1.bf16.msra.mxu0 %v491_v13  ;;  %477 = vmatpush1.bf16.msra.mxu1 %v491_v13 }
  0x2b   :  { %257 = vmatprep.subr.bf16.mxu0 %v518_v0  ;;  %465 = vmatprep.subr.bf16.mxu1 %v518_v0 }
  0x2e   :  { %258 = vmatpush1.bf16.msra.mxu0 %v492_v14  ;;  %478 = vmatpush1.bf16.msra.mxu1 %v492_v14 }
  0x2f   :  { %259 = vmatprep.subr.bf16.mxu0 %v518_v0  ;;  %466 = vmatprep.subr.bf16.mxu1 %v518_v0 }
  0x32   :  { %260 = vmatpush1.bf16.msra.mxu0 %v233_v16  ;;  %479 = vmatpush1.bf16.msra.mxu1 %v233_v16 }
  0x35   :  { %268 = vmatmul.mubr.bf16.vlgmr.msra.gmra.mrb[0].mxu0 %v494_v17  ;;  %300 = vmatmul.mubr.bf16.vlgmr.msra.gmra.mrb[0].mxu1 %v497_v18 }
  0x36   :  { %445 = vmatprep.mubr.msk.bf16.mxu0 %vm206_vm0, %v500_v19  ;;  %449 = vmatprep.mubr.msk.bf16.mxu1 %vm206_vm0, %v502_v20 }
  0x3d   :  { %276 = vmatmul.mubr.bf16.gmra.mrb[4].mxu0 %v504_v21  ;;  %308 = vmatmul.mubr.bf16.gmra.mrb[4].mxu1 %v505_v22 }
  0x3e   :  { %446 = vmatprep.mubr.msk.bf16.mxu0 %vm206_vm0, %v506_v23  ;;  %450 = vmatprep.mubr.msk.bf16.mxu1 %vm206_vm0, %v508_v24 }
  0x45   :  { %284 = vmatmul.mubr.bf16.gmra.mrb[8].mxu0 %v510_v25  ;;  %316 = vmatmul.mubr.bf16.gmra.mrb[8].mxu1 %v511_v26 }
  0x46   :  { %447 = vmatprep.mubr.msk.bf16.mxu0 %vm206_vm0, %v512_v27  ;;  %451 = vmatprep.mubr.msk.bf16.mxu1 %vm206_vm0, %v514_v28 }
  0x4d   :  { %292 = vmatmul.mubr.bf16.gmra.mrb[12].mxu0 %v516_v29  ;;  %324 = vmatmul.mubr.bf16.gmra.mrb[12].mxu1 %v517_v30 }
 0x108   :  { %v269_v32 = vpop.f32.mrb[0].mxu0  ;;  %v301_v34 = vpop.f32.mrb[0].mxu1 }
 0x109   :  { %v339_v35 = vmul.f32 %v668_v31, %v269_v32  ;;  %v347_v36 = vmul.f32 %v668_v31, %v301_v34  ;;  %v271_v37 = vpop.f32.mrb[1].mxu0  ;;  %v303_v38 = vpop.f32.mrb[1].mxu1 }
 0x10a   :  { %v272_v39 = vpop.f32.mrb[2].mxu0  ;;  %v304_v40 = vpop.f32.mrb[2].mxu1 }
 0x10b   :  { %v362_v41 = vadd.f32 %v673_v33, %v339_v35  ;;  %v370_v42 = vadd.f32 %v673_v33, %v347_v36  ;;  %v340_v43 = vmul.f32 %v668_v31, %v272_v39  ;;  %v348_v44 = vmul.f32 %v668_v31, %v304_v40  ;;  %v274_v45 = vpop.f32.mrb[3].mxu0  ;;  %v306_v46 = vpop.f32.mrb[3].mxu1 }
 0x10d   :  { %v378_v47 = vmax.f32 %v362_v41, 0.0  ;;  %v386_v48 = vmax.f32 %v370_v42, 0.0  ;;  %v363_v49 = vadd.f32 %v673_v33, %v340_v43  ;;  %v371_v50 = vadd.f32 %v673_v33, %v348_v44 }
 0x10f   :  { %395 = vst.msk [vmem:[%s775_s4] sm:$0xff] %vm394_vm2, %v378_v47  ;;  %403 = vst.msk [vmem:[%s775_s4 + $0x40] sm:$0xff] %vm394_vm2, %v386_v48  ;;  %v379_v51 = vmax.f32 %v363_v49, 0.0  ;;  %v387_v52 = vmax.f32 %v371_v50, 0.0 }
 0x110   :  { %v277_v53 = vpop.f32.mrb[4].mxu0  ;;  %v309_v54 = vpop.f32.mrb[4].mxu1 }
 0x111   :  { %396 = vst.msk [vmem:[%s775_s4 + $0x8] sm:$0xff] %vm394_vm2, %v379_v51  ;;  %404 = vst.msk [vmem:[%s775_s4 + $0x48] sm:$0xff] %vm394_vm2, %v387_v52  ;;  %v341_v55 = vmul.f32 %v668_v31, %v277_v53  ;;  %v349_v56 = vmul.f32 %v668_v31, %v309_v54  ;;  %v279_v57 = vpop.f32.mrb[5].mxu0  ;;  %v311_v58 = vpop.f32.mrb[5].mxu1 }
 0x112   :  { %v280_v59 = vpop.f32.mrb[6].mxu0  ;;  %v312_v60 = vpop.f32.mrb[6].mxu1 }
 0x113   :  { %v364_v61 = vadd.f32 %v673_v33, %v341_v55  ;;  %v372_v62 = vadd.f32 %v673_v33, %v349_v56  ;;  %v342_v63 = vmul.f32 %v668_v31, %v280_v59  ;;  %v350_v0 = vmul.f32 %v668_v31, %v312_v60  ;;  %v282_v1 = vpop.f32.mrb[7].mxu0  ;;  %v314_v2 = vpop.f32.mrb[7].mxu1 }
 0x115   :  { %v380_v3 = vmax.f32 %v364_v61, 0.0  ;;  %v388_v4 = vmax.f32 %v372_v62, 0.0  ;;  %v365_v5 = vadd.f32 %v673_v33, %v342_v63  ;;  %v373_v6 = vadd.f32 %v673_v33, %v350_v0 }
 0x117   :  { %397 = vst.msk [vmem:[%s775_s4 + $0x10] sm:$0xff] %vm394_vm2, %v380_v3  ;;  %405 = vst.msk [vmem:[%s775_s4 + $0x50] sm:$0xff] %vm394_vm2, %v388_v4  ;;  %v381_v7 = vmax.f32 %v365_v5, 0.0  ;;  %v389_v8 = vmax.f32 %v373_v6, 0.0 }
 0x118   :  { %v285_v9 = vpop.f32.mrb[8].mxu0  ;;  %v317_v10 = vpop.f32.mrb[8].mxu1 }
 0x119   :  { %398 = vst.msk [vmem:[%s775_s4 + $0x18] sm:$0xff] %vm394_vm2, %v381_v7  ;;  %406 = vst.msk [vmem:[%s775_s4 + $0x58] sm:$0xff] %vm394_vm2, %v389_v8  ;;  %v343_v11 = vmul.f32 %v668_v31, %v285_v9  ;;  %v351_v12 = vmul.f32 %v668_v31, %v317_v10  ;;  %v287_v13 = vpop.f32.mrb[9].mxu0  ;;  %v319_v14 = vpop.f32.mrb[9].mxu1 }
 0x11a   :  { %v288_v15 = vpop.f32.mrb[10].mxu0  ;;  %v320_v16 = vpop.f32.mrb[10].mxu1 }
 0x11b   :  { %v366_v17 = vadd.f32 %v673_v33, %v343_v11  ;;  %v374_v18 = vadd.f32 %v673_v33, %v351_v12  ;;  %v344_v19 = vmul.f32 %v668_v31, %v288_v15  ;;  %v352_v20 = vmul.f32 %v668_v31, %v320_v16  ;;  %v290_v21 = vpop.f32.mrb[11].mxu0  ;;  %v322_v22 = vpop.f32.mrb[11].mxu1 }
 0x11d   :  { %v382_v23 = vmax.f32 %v366_v17, 0.0  ;;  %v390_v24 = vmax.f32 %v374_v18, 0.0  ;;  %v367_v25 = vadd.f32 %v673_v33, %v344_v19  ;;  %v375_v26 = vadd.f32 %v673_v33, %v352_v20 }
 0x11f   :  { %399 = vst.msk [vmem:[%s775_s4 + $0x20] sm:$0xff] %vm394_vm2, %v382_v23  ;;  %407 = vst.msk [vmem:[%s775_s4 + $0x60] sm:$0xff] %vm394_vm2, %v390_v24  ;;  %v383_v27 = vmax.f32 %v367_v25, 0.0  ;;  %v391_v28 = vmax.f32 %v375_v26, 0.0 }
 0x120   :  { %v293_v29 = vpop.f32.mrb[12].mxu0  ;;  %v325_v30 = vpop.f32.mrb[12].mxu1 }
 0x121   :  { %400 = vst.msk [vmem:[%s775_s4 + $0x28] sm:$0xff] %vm394_vm2, %v383_v27  ;;  %408 = vst.msk [vmem:[%s775_s4 + $0x68] sm:$0xff] %vm394_vm2, %v391_v28  ;;  %v345_v32 = vmul.f32 %v668_v31, %v293_v29  ;;  %v353_v34 = vmul.f32 %v668_v31, %v325_v30  ;;  %v295_v35 = vpop.f32.mrb[13].mxu0  ;;  %v327_v36 = vpop.f32.mrb[13].mxu1 }
 0x122   :  { %v296_v37 = vpop.f32.mrb[14].mxu0  ;;  %v328_v38 = vpop.f32.mrb[14].mxu1 }
 0x123   :  { %v368_v39 = vadd.f32 %v673_v33, %v345_v32  ;;  %v376_v40 = vadd.f32 %v673_v33, %v353_v34  ;;  %v346_v41 = vmul.f32 %v668_v31, %v296_v37  ;;  %v354_v42 = vmul.f32 %v668_v31, %v328_v38  ;;  %v298_v43 = vpop.f32.mrb[15].mxu0  ;;  %v330_v44 = vpop.f32.mrb[15].mxu1 }
 0x125   :  { %v384_v45 = vmax.f32 %v368_v39, 0.0  ;;  %v392_v46 = vmax.f32 %v376_v40, 0.0  ;;  %v369_v47 = vadd.f32 %v673_v33, %v346_v41  ;;  %v377_v48 = vadd.f32 %v673_v33, %v354_v42 }
 0x127   :  { %401 = vst.msk [vmem:[%s775_s4 + $0x30] sm:$0xff] %vm394_vm2, %v384_v45  ;;  %409 = vst.msk [vmem:[%s775_s4 + $0x70] sm:$0xff] %vm394_vm2, %v392_v46  ;;  %v385_v49 = vmax.f32 %v369_v47, 0.0  ;;  %v393_v31 = vmax.f32 %v377_v48, 0.0 }
 0x129   :  { %402 = vst.msk [vmem:[%s775_s4 + $0x38] sm:$0xff] %vm394_vm2, %v385_v49  ;;  %410 = vst.msk [vmem:[%s775_s4 + $0x78] sm:$0xff] %vm394_vm2, %v393_v31 }

// kernel: deepcnn300_forward.15
= control target key start
LH: loop header
LB: loop body
LE: loop exit
PB: predicated region body
PF: predicated region fallthrough
CT: control target
= control target key end

     0   :  { %s1270_s9 = smov 0   ;;  %s1434_s0 = inlined_call_operand.vmem [shape: bf16[2,42,24], index: 0, kind: input, shape index: {}]   ;;  %s1435_s1 = inlined_call_operand.vmem [shape: bf16[9,24,8], index: 1, kind: input, shape index: {}]   ;;  %s1436_s2 = inlined_call_operand.vmem [shape: f32[2,24,8], index: 2, kind: output, shape index: {}]  }
   0x1 LB: > { %s977_s10 = sadd.s32 4294967295, %s1253_s9   ;;  %p981_p0 = scmp.ge.s32.totalorder %s1253_s9, 1  ;;  %s1253_s9 = sphi %s1270_s9, %s12_s9  }
   0x2   : > { %p112_p1 = scmp.lt.s32.totalorder %s1253_s9, 3 }
   0x4   : > { %p113_p2 = pnand %p981_p0, %p112_p1 }
   0x5   : > { %v1216_v0 = vld [vmem:[%s1435_s1 + $0x30] sm:$0xff] (!%p113_p2)   ;;  %vm198_vm0 = vcmask (!%p113_p2), 1043456   ;;  %p134_p3 = scmp.lt.s32.totalorder (!%p113_p2), %s977_s10, 1  ;;  %v1218_v2 = vld [vmem:[%s1435_s1 + $0x38] ss:$0 sps:$4 sm:$0xff] (!%p113_p2)   ;;  %v1225_v5 = vld [vmem:[%s1435_s1 + $0x3c] sm:$0xff] (!%p113_p2)  }
   0x6   : > { %116 = sbr.rel (%p113_p2) target bundleno = 296 (0x128), region = 28  ;;  %v1217_v1 = vld [vmem:[%s1435_s1 + $0xc] sm:$0xff] (!%p113_p2)   ;;  %1127 = vmatprep.subr.bf16.mxu0 (!%p113_p2), %v1216_v0  ;;  %v1219_v3 = vld [vmem:[%s1435_s1 + $0x14] ss:$0 sps:$4 sm:$0xff] (!%p113_p2)   ;;  %v524_v4 = vsel (!%p113_p2), %vm198_vm0, %v1218_v2, 0  ;;  %v1226_v7 = vld [vmem:[%s1435_s1] sm:$0xff] (!%p113_p2)  }
   0x7   : > { %1095 = vmatprep.subr.bf16.mxu1 (!%p113_p2), %v1217_v1  ;;  %1128 = vmatpush3.bf16.msra.mxu0 (!%p113_p2), %v1216_v0  ;;  %v200_v6 = vsel (!%p113_p2), %vm198_vm0, %v1219_v3, 0  ;;  %vm166_vm1 = vsmask.f32 (!%p113_p2), 7424  ;;  %vm191_vm2 = vcmask (!%p113_p2), 195584   ;;  %vm490_vm3 = vsmask.f32 (!%p113_p2), 4352 }
   0x8   : > { %1096 = vmatpush3.bf16.msra.mxu1 (!%p113_p2), %v1217_v1  ;;  %1202 = vmatprep.subr.msk.bf16.mxu0 (!%p113_p2), %vm198_vm0, %v1218_v2  ;;  %v1227_v37 = vld [vmem:[%s1435_s1 + $0x44] ss:$0 sps:$4 sm:$0xff] (!%p113_p2)   ;;  %v1228_v38 = vld [vmem:[%s1435_s1 + $0x8] ss:$0 sps:$4 sm:$0xff] (!%p113_p2)   ;;  %v1232_v47 = vld [vmem:[%s1435_s1 + $0x18] sm:$0xff] (!%p113_p2)   ;;  %vm324_vm4 = vcmask (!%p113_p2), 1046528  }
   0x9   : > { %1198 = vmatprep.subr.msk.bf16.mxu1 (!%p113_p2), %vm198_vm0, %v1219_v3  ;;  %v266_v46 = vsel (!%p113_p2), %vm198_vm0, %v1228_v38, 0  ;;  %v599_v51 = vsel (!%p113_p2), %vm198_vm0, %v1227_v37, 0  ;;  %v1230_v52 = vld [vmem:[%s1435_s1 + $0x48] sm:$0xff] (!%p113_p2)   ;;  %vm670_vm5 = vcmask (!%p113_p2), 1045504   ;;  %v1234_v61 = vld [vmem:[%s1435_s1 + $0x20] ss:$0 sps:$4 sm:$0xff] (!%p113_p2)  }
   0xa   : > { %v1233_v63 = vld [vmem:[%s1435_s1 + $0x50] ss:$0 sps:$4 sm:$0xff] (!%p113_p2)   ;;  %vm409_vm6 = vcmask (!%p113_p2), 1044480   ;;  %vm751_vm7 = vsmask.f32 (!%p113_p2), 5376  ;;  %vm918_vm8 = vcmask (!%p113_p2), 64512  }
   0xb   : > { %1130 = vmatpush3.bf16.msra.mxu0 (!%p113_p2), %v524_v4 }
   0xc   : > { %1098 = vmatpush3.bf16.msra.mxu1 (!%p113_p2), %v200_v6  ;;  %1135 = vmatprep.subr.bf16.mxu0 (!%p113_p2), %v1225_v5  ;;  %v344_v6 = vsel (!%p113_p2), %vm198_vm0, %v1234_v61, 0 }
   0xd   : > { %s1438_s10 = smov (!%p134_p3, %s977_s10), 1  ;;  %1103 = vmatprep.subr.bf16.mxu1 %v1226_v7 }
   0xe   : > { %s1207_s21 = smul.u32 24, %s1438_s10 }
  0x10   : > { %s1308_s26 = scalar_lea.vmem %s1434_s0, %s1207_s21  ;;  %s143_s28 = scalar_lea.vmem %s1436_s2, %s1207_s21 }
  0x11   : > { %v145_v8 = vld [vmem:[%s1308_s26] sm:$0xf]  ;;  %v146_v9 = vld [vmem:[%s1308_s26 + $0x4] sm:$0xf]  ;;  %v1313_v10 = vld [vmem:[%s1308_s26 + $0x8] sm:$0xf] }
  0x12   : > { %v151_v11 = vld [vmem:[%s1308_s26 + $0xc] sm:$0x1]  ;;  %v987_v12 = vcombine.low %v145_v8, %v146_v9  ;;  %v397_v13 = vld [vmem:[%s1308_s26] sm:$0x8]  ;;  %v652_v40 = vld [vmem:[%s1308_s26 + $0x4] sm:$0xc]  ;;  %v1026_v44 = vcombine.low %v146_v9, %v1313_v10  ;;  %v993_v58 = vcombine.low %v1313_v10, %v1313_v10 }
  0x13   : > { %v1318_v14 = vld [vmem:[%s1308_s26 + $0xc] sm:$0xf]  ;;  %v1321_v15 = vcombine.low %v1313_v10, %v151_v11  ;;  %v1323_v16 = vcombine.low %v397_v13, %v146_v9  ;;  %v316_v39 = vld [vmem:[%s1308_s26] sm:$0xe]  ;;  %v1341_v41 = vld [vmem:[%s1308_s26 + $0x8] sm:$0xf] }
  0x14   : > { %v1018_v17 = vcombine.low %v1313_v10, %v1318_v14  ;;  %v168_v18 = vshrl.u32 %v987_v12, 16  ;;  %v170_v19 = vshll.u32 %v987_v12, 16  ;;  %v654_v42 = vld [vmem:[%s1308_s26 + $0xc] sm:$0xf]  ;;  %v655_v45 = vld [vmem:[%s1308_s26 + $0x10] sm:$0x3]  ;;  %v1001_v48 = vcombine.low %v316_v39, %v146_v9 }
  0x15   : > { %v175_v20 = vshll.u32 %v1321_v15, 16  ;;  %v179_v21 = vshrl.u32 %v1321_v15, 16  ;;  %v492_v22 = vshrl.u32 %v1323_v16, 16  ;;  %v495_v23 = vshll.u32 %v1323_v16, 16  ;;  %v743_v53 = vld [vmem:[%s1308_s26 + $0x10] sm:$0x7] }
  0x16   : > { %v172_v24 = vrot.slane %v170_v19, 1  ;;  %v500_v25 = vshrl.u32 %v1018_v17, 16  ;;  %v503_v26 = vshll.u32 %v1018_v17, 16  ;;  %v1035_v49 = vcombine.low %v652_v40, %v1341_v41  ;;  %v398_v1 = vld [vmem:[%s1308_s26 + $0xc] sm:$0x7]  ;;  %v1239_v11 = vld [vmem:[%s1435_s1 + $0x54] sm:$0xff]  }
  0x17   : > { %v177_v27 = vrot.slane %v175_v20, 1  ;;  %v494_v28 = vrot.slane %v492_v22, 3  ;;  %v497_v29 = vrot.slane %v495_v23, 4  ;;  %v1036_v50 = vcombine.low %v654_v42, %v655_v45  ;;  %v1242_v20 = vld [vmem:[%s1435_s1 + $0x2c] ss:$0 sps:$4 sm:$0xff]  }
  0x18   : > { %v173_v30 = vor.u32 %v172_v24, %v168_v18  ;;  %v502_v31 = vrot.slane %v500_v25, 3  ;;  %v505_v32 = vrot.slane %v503_v26, 4  ;;  %v325_v54 = vrot.slane %v1001_v48, 1  ;;  %v1241_v22 = vld [vmem:[%s1435_s1 + $0x5c] ss:$0 sps:$4 sm:$0xff]   ;;  %v1244_v26 = vld [vmem:[%s1435_s1 + $0x60] sm:$0xff]  }
  0x19   : > { %v181_v33 = vor.u32 %v179_v21, %v177_v27  ;;  %v498_v34 = vor.u32 %v497_v29, %v494_v28  ;;  %v326_v55 = vrot.slane %v1321_v15, 1  ;;  %v671_v56 = vrot.slane %v1035_v49, 2  ;;  %v838_v23 = vld [vmem:[%s1308_s26 + $0x4] sm:$0x8] }
  0x1a   : > { %v178_v35 = vsel %vm166_vm1, %v173_v30, %v177_v27  ;;  %v506_v36 = vor.u32 %v505_v32, %v502_v31  ;;  %v672_v57 = vrot.slane %v1036_v50, 2  ;;  %v1366_v59 = vcombine.low %v654_v42, %v743_v53  ;;  %v1245_v30 = vld [vmem:[%s1435_s1 + $0x68] ss:$0 sps:$4 sm:$0xff]  }
  0x1b   : > { %1099 = vmatprep.mubr.msk.bf16.mxu1 %vm191_vm2, %v178_v35  ;;  %v1027_v60 = vcombine.low %v1318_v14, %v1318_v14  ;;  %v327_v62 = vsel %vm324_vm4, %v325_v54, %v326_v55  ;;  %v753_v2 = vshrl.u32 %v1035_v49, 16  ;;  %v756_v3 = vshll.u32 %v1035_v49, 16 }
  0x1c   : > { %v507_v43 = vsel %vm490_vm3, %v498_v34, %v506_v36  ;;  %1100 = vmatmul.mubr.msk.bf16.vlgmr.msra.gmra.mrb[0].mxu1 %vm191_vm2, %v181_v33  ;;  %v673_v0 = vsel %vm670_vm5, %v671_v56, %v672_v57  ;;  %v761_v4 = vshrl.u32 %v1366_v59, 16  ;;  %v1010_v8 = vcombine.low %v1313_v10, %v398_v1 }
  0x1d   : > { %1131 = vmatprep.mubr.msk.bf16.mxu0 %vm191_vm2, %v507_v43  ;;  %1104 = vmatpush3.bf16.msra.mxu1 %v1226_v7  ;;  %v1240_v7 = vld [vmem:[%s1435_s1 + $0x24] sm:$0xff]   ;;  %v690_v9 = vsel %vm198_vm0, %v1233_v63, 0  ;;  %v758_v13 = vrot.slane %v756_v3, 3  ;;  %v410_v10 = vrot.slane %v1323_v16, 3  ;;  %v429_v24 = vsel %vm198_vm0, %v1242_v20, 0 }
  0x1e   : > { %1132 = vmatmul.mubr.msk.bf16.vlgmr.msra.gmra.mrb[0].mxu0 %vm191_vm2, %v506_v36  ;;  %1199 = vmatprep.subr.msk.bf16.mxu1 %vm198_vm0, %v1228_v38  ;;  %v763_v14 = vrot.slane %v761_v4, 2  ;;  %v411_v17 = vrot.slane %v1010_v8, 3  ;;  %v785_v25 = vsel %vm198_vm0, %v1241_v22, 0  ;;  %v1052_v27 = vcombine.low %v838_v23, %v1341_v41 }
  0x1f   : > { %1136 = vmatpush3.bf16.msra.mxu0 %v1225_v5  ;;  %1107 = vmatprep.mubr.msk.bf16.mxu1 %vm191_vm2, %v987_v12  ;;  %v764_v5 = vshll.u32 %v1366_v59, 16  ;;  %v755_v12 = vrot.slane %v753_v2, 2  ;;  %v847_v29 = vrot.slane %v1366_v59, 3  ;;  %v865_v32 = vsel %vm198_vm0, %v1245_v30, 0 }
  0x20   : > { %1203 = vmatprep.subr.msk.bf16.mxu0 %vm198_vm0, %v1227_v37  ;;  %1139 = vmatprep.mubr.msk.bf16.mxu0 %vm191_vm2, %v1026_v44  ;;  %v412_v21 = vsel %vm409_vm6, %v410_v10, %v411_v17  ;;  %v846_v28 = vrot.slane %v1052_v27, 3 }
  0x21   : > { %1106 = vmatpush3.bf16.msra.mxu1 %v266_v46  ;;  %v766_v15 = vrot.slane %v764_v5, 3  ;;  %v759_v18 = vor.u32 %v758_v13, %v755_v12 }
  0x22   : > { %1111 = vmatprep.subr.bf16.mxu1 %v1232_v47  ;;  %v848_v31 = vsel %vm409_vm6, %v846_v28, %v847_v29 }
  0x23   : > { %1138 = vmatpush3.bf16.msra.mxu0 %v599_v51  ;;  %v767_v19 = vor.u32 %v766_v15, %v763_v14 }
  0x24   : > { %1143 = vmatprep.subr.bf16.mxu0 %v1230_v52 }
  0x25   : > { %v768_v16 = vsel %vm751_vm7, %v759_v18, %v767_v19 }
  0x28   : > { %1108 = vmatmul.mubr.msk.bf16.vlgmr.msra.gmra.mrb[0].mxu1 %vm191_vm2, %v993_v58 }
  0x29   : > { %1112 = vmatpush3.bf16.msra.mxu1 %v1232_v47  ;;  %1115 = vmatprep.mubr.msk.bf16.mxu1 %vm191_vm2, %v327_v62 }
  0x2a   : > { %1140 = vmatmul.mubr.msk.bf16.vlgmr.msra.gmra.mrb[0].mxu0 %vm191_vm2, %v1027_v60  ;;  %1200 = vmatprep.subr.msk.bf16.mxu1 %vm198_vm0, %v1234_v61 }
  0x2b   : > { %1144 = vmatpush3.bf16.msra.mxu0 %v1230_v52  ;;  %1147 = vmatprep.mubr.msk.bf16.mxu0 %vm191_vm2, %v673_v0 }
  0x2c   : > { %1204 = vmatprep.subr.msk.bf16.mxu0 %vm198_vm0, %v1233_v63 }
  0x2d   : > { %1114 = vmatpush3.bf16.msra.mxu1 %v344_v6 }
  0x2e   : > { %1119 = vmatprep.subr.bf16.mxu1 %v1240_v7 }
  0x2f   : > { %1146 = vmatpush3.bf16.msra.mxu0 %v690_v9 }
  0x30   : > { %1151 = vmatprep.subr.bf16.mxu0 %v1239_v11 }
  0x34   : > { %1116 = vmatmul.mubr.msk.bf16.vlgmr.msra.gmra.mrb[0].mxu1 %vm191_vm2, %v326_v55 }
  0x35   : > { %1120 = vmatpush3.bf16.msra.mxu1 %v1240_v7  ;;  %1123 = vmatprep.mubr.msk.bf16.mxu1 %vm191_vm2, %v412_v21 }
  0x36   : > { %1148 = vmatmul.mubr.msk.bf16.vlgmr.msra.gmra.mrb[0].mxu0 %vm191_vm2, %v672_v57  ;;  %1201 = vmatprep.subr.msk.bf16.mxu1 %vm198_vm0, %v1242_v20 }
  0x37   : > { %1152 = vmatpush3.bf16.msra.mxu0 %v1239_v11  ;;  %1155 = vmatprep.mubr.msk.bf16.mxu0 %vm191_vm2, %v768_v16 }
  0x38   : > { %1205 = vmatprep.subr.msk.bf16.mxu0 %vm198_vm0, %v1241_v22 }
  0x39   : > { %1122 = vmatpush3.bf16.msra.mxu1 %v429_v24 }
  0x3b   : > { %1154 = vmatpush3.bf16.msra.mxu0 %v785_v25 }
  0x3c   : > { %1159 = vmatprep.subr.bf16.mxu0 %v1244_v26 }
  0x40   : > { %1124 = vmatmul.mubr.msk.bf16.vlgmr.msra.gmra.mrb[0].mxu1 %vm191_vm2, %v411_v17 }
  0x42   : > { %1156 = vmatmul.mubr.msk.bf16.vlgmr.msra.gmra.mrb[0].mxu0 %vm191_vm2, %v767_v19 }
  0x43   : > { %1160 = vmatpush3.bf16.msra.mxu0 %v1244_v26  ;;  %1163 = vmatprep.mubr.msk.bf16.mxu0 %vm191_vm2, %v848_v31 }
  0x44   : > { %1206 = vmatprep.subr.msk.bf16.mxu0 %vm198_vm0, %v1245_v30 }
  0x47   : > { %1162 = vmatpush3.bf16.msra.mxu0 %v865_v32 }
  0x4e   : > { %1164 = vmatmul.mubr.msk.bf16.vlgmr.msra.gmra.mrb[0].mxu0 %vm191_vm2, %v847_v29 }
 0x113   : > { %v1125_v33 = vpop.f32.mrb[0].mxu1 }
 0x114   : > { %v465_v34 = vpop.f32.mrb[1].mxu1 }
 0x115   : > { %v1126_v35 = vpop.f32.mrb[2].mxu1 }
 0x116   : > { %v468_v36 = vpop.f32.mrb[3].mxu1 }
 0x121   : > { %v1165_v37 = vpop.f32.mrb[0].mxu0 }
 0x122   : > { %v1167_v38 = vadd.f32 %v1165_v37, %v1125_v33  ;;  %v901_v39 = vpop.f32.mrb[1].mxu0 }
 0x123   : > { %v1168_v40 = vadd.f32 %v901_v39, %v465_v34  ;;  %v1166_v41 = vpop.f32.mrb[2].mxu0 }
 0x124   : > { %921 = vst.msk [vmem:[%s143_s28 + $0x10] sm:$0xff] %vm918_vm8, %v1167_v38  ;;  %v904_v42 = vpop.f32.mrb[3].mxu0 }
 0x125   : > { %919 = vst.msk [vmem:[%s143_s28] sm:$0xff] %vm918_vm8, %v1168_v40  ;;  %v1169_v43 = vadd.f32 %v904_v42, %v468_v36 }
 0x127   : > { %920 = vst.msk [vmem:[%s143_s28 + $0x8] sm:$0xff] %vm918_vm8, %v1169_v43 }
 0x128 PF: > { %s12_s9 = sadd.s32 1, %s1253_s9  }
 0x129   : > { %p9_p4 = scmp.ge.s32.totalorder %s12_s9, 4  }
 0x12b   :  { %11 = sbr.rel (!%p9_p4) target bundleno = 1 (0x1), region = 66 }

// kernel: deepcnn300_forward.16
= control target key start
LH: loop header
LB: loop body
LE: loop exit
PB: predicated region body
PF: predicated region fallthrough
CT: control target
= control target key end

     0   :  { %vm75_vm0 = vcmask 1043456   ;;  %vm68_vm1 = vcmask 195584   ;;  %s268_s3 = inlined_call_operand.vmem [shape: bf16[24,24], index: 3, kind: input, shape index: {}]   ;;  %s269_s0 = inlined_call_operand.vmem [shape: f32[32,24], index: 0, kind: input, shape index: {}]   ;;  %s270_s1 = inlined_call_operand.vmem [shape: f32[1,24], index: 1, kind: input, shape index: {}]   ;;  %s271_s2 = inlined_call_operand.vmem [shape: f32[1,24], index: 2, kind: input, shape index: {}]   ;;  %s272_s4 = inlined_call_operand.vmem [shape: f32[1,24], index: 4, kind: input, shape index: {}]   ;;  %s273_s5 = inlined_call_operand.vmem [shape: f32[1,24], index: 5, kind: input, shape index: {}]   ;;  %s274_s6 = inlined_call_operand.vmem [shape: f32[32,24], index: 6, kind: output, shape index: {}]  }
   0x1   :  { %v183_v0 = vld [vmem:[%s268_s3] sm:$0xff]   ;;  %v184_v1 = vld [vmem:[%s268_s3 + $0x8] ss:$0 sps:$4 sm:$0xff]   ;;  %v26_v8 = vld [vmem:[%s269_s0 + $0x10] sm:$0xff] }
   0x2   :  { %v24_v2 = vld [vmem:[%s269_s0] sm:$0xff]  ;;  %v25_v3 = vld [vmem:[%s269_s0 + $0x8] sm:$0xff]  ;;  %174 = vmatprep.subr.bf16.mxu0 %v183_v0  ;;  %v27_v9 = vld [vmem:[%s269_s0 + $0x18] sm:$0xff]  ;;  %v77_v12 = vsel %vm75_vm0, %v184_v1, 0 }
   0x3   :  { %v162_v4 = vld [vmem:[%s270_s1] ss:$0 sm:$0xff]  ;;  %175 = vmatpush3.bf16.msra.mxu0 %v183_v0 }
   0x4   :  { %v163_v5 = vld [vmem:[%s271_s2] ss:$0 sm:$0xff]  ;;  %v35_v6 = vmul.f32 %v162_v4, %v24_v2  ;;  %v36_v7 = vmul.f32 %v162_v4, %v25_v3  ;;  %v37_v10 = vmul.f32 %v162_v4, %v26_v8  ;;  %v38_v11 = vmul.f32 %v162_v4, %v27_v9  ;;  %182 = vmatprep.subr.msk.bf16.mxu0 %vm75_vm0, %v184_v1 }
   0x5   :  { %v168_v23 = vld [vmem:[%s272_s4] ss:$0 sm:$0xff] }
   0x6   :  { %v46_v13 = vadd.f32 %v163_v5, %v35_v6  ;;  %v47_v14 = vadd.f32 %v163_v5, %v36_v7  ;;  %v48_v15 = vadd.f32 %v163_v5, %v37_v10  ;;  %v49_v16 = vadd.f32 %v163_v5, %v38_v11  ;;  %v169_v25 = vld [vmem:[%s273_s5] ss:$0 sm:$0xff] }
   0x7   :  { %177 = vmatpush3.bf16.msra.mxu0 %v77_v12 }
   0x8   :  { %v50_v17 = vmax.f32 %v46_v13, 0.0  ;;  %v51_v18 = vmax.f32 %v47_v14, 0.0  ;;  %v52_v19 = vmax.f32 %v48_v15, 0.0  ;;  %v53_v20 = vmax.f32 %v49_v16, 0.0 }
   0xa   :  { %v54_v21 = vpack.c.bf16 %v51_v18, %v50_v17  ;;  %v55_v22 = vpack.c.bf16 %v53_v20, %v52_v19 }
   0xc   :  { %178 = vmatprep.mubr.msk.bf16.mxu0 %vm68_vm1, %v54_v21 }
   0xd   :  { %179 = vmatmul.mubr.msk.bf16.vlgmr.msra.gmra.mrb[0].mxu0 %vm68_vm1, %v55_v22 }
  0xe0   :  { %v180_v24 = vpop.f32.mrb[0].mxu0 }
  0xe1   :  { %v137_v26 = vmul.f32 %v180_v24, %v168_v23  ;;  %v113_v27 = vpop.f32.mrb[1].mxu0 }
  0xe2   :  { %v135_v28 = vmul.f32 %v168_v23, %v113_v27  ;;  %v181_v29 = vpop.f32.mrb[2].mxu0 }
  0xe3   :  { %v148_v30 = vadd.f32 %v169_v25, %v137_v26  ;;  %v138_v31 = vmul.f32 %v181_v29, %v168_v23  ;;  %v116_v32 = vpop.f32.mrb[3].mxu0 }
  0xe4   :  { %v146_v33 = vadd.f32 %v169_v25, %v135_v28  ;;  %v136_v34 = vmul.f32 %v168_v23, %v116_v32 }
  0xe5   :  { %v152_v35 = vmax.f32 %v148_v30, 0.0  ;;  %v149_v36 = vadd.f32 %v169_v25, %v138_v31 }
  0xe6   :  { %v150_v37 = vmax.f32 %v146_v33, 0.0  ;;  %v147_v38 = vadd.f32 %v169_v25, %v136_v34 }
  0xe7   :  { %156 = vst.msk [vmem:[%s274_s6 + $0x10] sm:$0xff] %vm68_vm1, %v152_v35  ;;  %v153_v39 = vmax.f32 %v149_v36, 0.0 }
  0xe8   :  { %154 = vst.msk [vmem:[%s274_s6] sm:$0xff] %vm68_vm1, %v150_v37  ;;  %v151_v40 = vmax.f32 %v147_v38, 0.0 }
  0xe9   :  { %157 = vst.msk [vmem:[%s274_s6 + $0x18] sm:$0xff] %vm68_vm1, %v153_v39 }
  0xea   :  { %155 = vst.msk [vmem:[%s274_s6 + $0x8] sm:$0xff] %vm68_vm1, %v151_v40 }

// kernel: deepcnn300_forward.19
= control target key start
LH: loop header
LB: loop body
LE: loop exit
PB: predicated region body
PF: predicated region fallthrough
CT: control target
= control target key end

     0   :  { %v135_v0 = vmov 0.0   ;;  %vm136_vm0 = vmmov 0   ;;  %vm51_vm1 = vcmask 130048   ;;  %vm112_vm2 = vcmask 195584   ;;  %s193_s3 = inlined_call_operand.vmem [shape: bf16[16,24], index: 3, kind: input, shape index: {}]   ;;  %s194_s0 = inlined_call_operand.vmem [shape: f32[8,16], index: 0, kind: input, shape index: {}]   ;;  %s195_s1 = inlined_call_operand.vmem [shape: f32[1,16], index: 1, kind: input, shape index: {}]   ;;  %s196_s2 = inlined_call_operand.vmem [shape: f32[1,16], index: 2, kind: input, shape index: {}]   ;;  %s197_s4 = inlined_call_operand.vmem [shape: f32[1,24], index: 4, kind: input, shape index: {}]   ;;  %s198_s5 = inlined_call_operand.vmem [shape: f32[1,24], index: 5, kind: input, shape index: {}]   ;;  %s199_s6 = inlined_call_operand.vmem [shape: f32[8,24], index: 6, kind: output, shape index: {}]  }
   0x1   :  { %126 = vmatprep.subr.bf16.mxu0 %v135_v0  ;;  %v134_v1 = vld [vmem:[%s193_s3] sm:$0xff]   ;;  %128 = vmatprep.mubr.msk.bf16.mxu0 %vm136_vm0, %v135_v0 }
   0x2   :  { %v24_v2 = vld [vmem:[%s194_s0] sm:$0xff]  ;;  %127 = vmatpush3.bf16.msra.mxu0 %v134_v1 }
   0x3   :  { %v118_v3 = vld [vmem:[%s195_s1] ss:$0 sm:$0xff] }
   0x4   :  { %v119_v4 = vld [vmem:[%s196_s2] ss:$0 sm:$0xff]  ;;  %v32_v5 = vmul.f32 %v118_v3, %v24_v2 }
   0x5   :  { %v122_v9 = vld [vmem:[%s197_s4] ss:$0 sm:$0xff] }
   0x6   :  { %v40_v6 = vadd.f32 %v119_v4, %v32_v5  ;;  %v123_v11 = vld [vmem:[%s198_s5] ss:$0 sm:$0xff] }
   0x8   :  { %v41_v7 = vmax.f32 %v40_v6, 0.0 }
   0xa   :  { %v42_v8 = vpack.c.bf16 %v41_v7, %v41_v7 }
   0xc   :  { %129 = vmatmul.mubr.msk.bf16.vlgmr.msra.gmra.mrb[0].mxu0 %vm51_vm1, %v42_v8 }
  0xdf   :  { %v89_v10 = vpop.f32.mrb[0].mxu0 }
  0xe0   :  { %v102_v12 = vmul.f32 %v122_v9, %v89_v10  ;;  %v130_v13 = vpop.f32.mrb[1].mxu0 }
  0xe1   :  { %v92_v14 = vpop.f32.mrb[2].mxu0 }
  0xe2   :  { %v110_v15 = vadd.f32 %v123_v11, %v102_v12  ;;  %v131_v16 = vpop.f32.mrb[3].mxu0 }
  0xe4   :  { %v111_v17 = vmax.f32 %v110_v15, 0.0 }
  0xe6   :  { %113 = vst.msk [vmem:[%s199_s6] sm:$0xff] %vm112_vm2, %v111_v17 }

// kernel: deepcnn300_forward.18
= control target key start
LH: loop header
LB: loop body
LE: loop exit
PB: predicated region body
PF: predicated region fallthrough
CT: control target
= control target key end

     0   :  { %v148_v0 = vmov 0.0   ;;  %vm149_vm0 = vmmov 0   ;;  %vm78_vm1 = vcmask 261120   ;;  %vm122_vm2 = vcmask 130048   ;;  %s217_s6 = inlined_call_operand.vmem [shape: bf16[32,16], index: 6, kind: input, shape index: {}]   ;;  %s218_s0 = inlined_call_operand.vmem [shape: f32[8,32], index: 0, kind: input, shape index: {}]   ;;  %s219_s4 = inlined_call_operand.vmem [shape: f32[1,32], index: 4, kind: input, shape index: {}]   ;;  %s220_s5 = inlined_call_operand.vmem [shape: f32[1,32], index: 5, kind: input, shape index: {}]   ;;  %s221_s1 = inlined_call_operand.vmem [shape: f32[8,32], index: 1, kind: input, shape index: {}]   ;;  %s222_s2 = inlined_call_operand.vmem [shape: f32[8,32], index: 2, kind: input, shape index: {}]   ;;  %s223_s3 = inlined_call_operand.vmem [shape: f32[8,32], index: 3, kind: input, shape index: {}]   ;;  %s224_s7 = inlined_call_operand.vmem [shape: f32[8,16], index: 7, kind: output, shape index: {}]  }
   0x1   :  { %136 = vmatprep.subr.bf16.mxu0 %v148_v0  ;;  %v146_v1 = vld [vmem:[%s217_s6] sm:$0xff]   ;;  %140 = vmatprep.mubr.msk.bf16.mxu0 %vm149_vm0, %v148_v0  ;;  %v147_v2 = vld [vmem:[%s217_s6 + $0x8] sm:$0xff]  }
   0x2   :  { %137 = vmatpush3.bf16.msra.mxu0 %v146_v1  ;;  %v128_v3 = vld [vmem:[%s219_s4] ss:$0 sm:$0xff] }
   0x3   :  { %v129_v4 = vld [vmem:[%s220_s5] ss:$0 sm:$0xff]  ;;  %138 = vmatprep.subr.bf16.mxu0 %v148_v0 }
   0x4   :  { %v29_v5 = vld [vmem:[%s218_s0] sm:$0xff] }
   0x5   :  { %v36_v6 = vmul.f32 %v128_v3, %v29_v5  ;;  %v45_v7 = vld [vmem:[%s221_s1] sm:$0xff] }
   0x6   :  { %v50_v8 = vld [vmem:[%s222_s2] sm:$0xff]  ;;  %v46_v10 = vmul.f32 %v128_v3, %v45_v7  ;;  %139 = vmatpush3.bf16.msra.mxu0 %v147_v2 }
   0x7   :  { %v55_v9 = vld [vmem:[%s223_s3] sm:$0xff]  ;;  %v51_v11 = vmul.f32 %v128_v3, %v50_v8  ;;  %v43_v13 = vadd.f32 %v129_v4, %v36_v6 }
   0x8   :  { %v56_v12 = vmul.f32 %v128_v3, %v55_v9  ;;  %v47_v14 = vadd.f32 %v129_v4, %v46_v10 }
   0x9   :  { %v52_v15 = vadd.f32 %v129_v4, %v51_v11  ;;  %v44_v17 = vmax.f32 %v43_v13, 0.0 }
   0xa   :  { %v57_v16 = vadd.f32 %v129_v4, %v56_v12  ;;  %v48_v18 = vmax.f32 %v47_v14, 0.0 }
   0xb   :  { %v53_v19 = vmax.f32 %v52_v15, 0.0 }
   0xc   :  { %v49_v20 = vadd.f32 %v48_v18, %v44_v17  ;;  %v58_v21 = vmax.f32 %v57_v16, 0.0 }
   0xe   :  { %v54_v22 = vadd.f32 %v53_v19, %v49_v20 }
  0x10   :  { %v59_v23 = vadd.f32 %v58_v21, %v54_v22 }
  0x12   :  { %v60_v24 = vmul.f32 0.25, %v59_v23 }
  0x14   :  { %v61_v25 = vpack.c.bf16 %v60_v24, %v60_v24 }
  0x16   :  { %141 = vmatmul.mubr.msk.bf16.vlgmr.msra.gmra.mrb[0].mxu0 %vm78_vm1, %v61_v25 }
  0xe9   :  { %v116_v26 = vpop.f32.mrb[0].mxu0 }
  0xea   :  { %123 = vst.msk [vmem:[%s224_s7] sm:$0xff] %vm122_vm2, %v116_v26  ;;  %v142_v27 = vpop.f32.mrb[1].mxu0 }
  0xeb   :  { %v119_v28 = vpop.f32.mrb[2].mxu0 }
  0xec   :  { %v143_v29 = vpop.f32.mrb[3].mxu0 }

// kernel: deepcnn300_forward.21
= control target key start
LH: loop header
LB: loop body
LE: loop exit
PB: predicated region body
PF: predicated region fallthrough
CT: control target
= control target key end

     0   :  { %v147_v0 = vmov 0.0   ;;  %vm59_vm0 = vcmask 1043456   ;;  %vm148_vm1 = vmmov 0   ;;  %vm55_vm2 = vcmask 195584   ;;  %s208_s3 = inlined_call_operand.vmem [shape: bf16[24,24], index: 3, kind: input, shape index: {}]   ;;  %s209_s0 = inlined_call_operand.vmem [shape: f32[8,24], index: 0, kind: input, shape index: {}]   ;;  %s210_s1 = inlined_call_operand.vmem [shape: f32[1,24], index: 1, kind: input, shape index: {}]   ;;  %s211_s2 = inlined_call_operand.vmem [shape: f32[1,24], index: 2, kind: input, shape index: {}]   ;;  %s212_s4 = inlined_call_operand.vmem [shape: f32[1,24], index: 4, kind: input, shape index: {}]   ;;  %s213_s5 = inlined_call_operand.vmem [shape: f32[1,24], index: 5, kind: input, shape index: {}]   ;;  %s214_s6 = inlined_call_operand.vmem [shape: f32[8,24], index: 6, kind: output, shape index: {}]  }
   0x1   :  { %135 = vmatprep.subr.bf16.mxu0 %v147_v0  ;;  %v145_v1 = vld [vmem:[%s208_s3] sm:$0xff]   ;;  %139 = vmatprep.mubr.msk.bf16.mxu0 %vm148_vm1, %v147_v0  ;;  %v146_v2 = vld [vmem:[%s208_s3 + $0x8] ss:$0 sps:$4 sm:$0xff]  }
   0x2   :  { %v24_v3 = vld [vmem:[%s209_s0] sm:$0xff]  ;;  %136 = vmatpush3.bf16.msra.mxu0 %v145_v1  ;;  %v61_v6 = vsel %vm59_vm0, %v146_v2, 0 }
   0x3   :  { %v125_v4 = vld [vmem:[%s210_s1] ss:$0 sm:$0xff]  ;;  %137 = vmatprep.subr.bf16.mxu0 %v147_v0 }
   0x4   :  { %v126_v5 = vld [vmem:[%s211_s2] ss:$0 sm:$0xff]  ;;  %v32_v7 = vmul.f32 %v125_v4, %v24_v3 }
   0x5   :  { %v130_v11 = vld [vmem:[%s212_s4] ss:$0 sm:$0xff] }
   0x6   :  { %v40_v8 = vadd.f32 %v126_v5, %v32_v7  ;;  %138 = vmatpush3.bf16.msra.mxu0 %v61_v6  ;;  %v131_v13 = vld [vmem:[%s213_s5] ss:$0 sm:$0xff] }
   0x8   :  { %v41_v9 = vmax.f32 %v40_v8, 0.0 }
   0xa   :  { %v42_v10 = vpack.c.bf16 %v41_v9, %v41_v9 }
   0xc   :  { %140 = vmatmul.mubr.msk.bf16.vlgmr.msra.gmra.mrb[0].mxu0 %vm55_vm2, %v42_v10 }
  0xdf   :  { %v97_v12 = vpop.f32.mrb[0].mxu0 }
  0xe0   :  { %v110_v14 = vmul.f32 %v130_v11, %v97_v12  ;;  %v141_v15 = vpop.f32.mrb[1].mxu0 }
  0xe1   :  { %v100_v16 = vpop.f32.mrb[2].mxu0 }
  0xe2   :  { %v118_v17 = vadd.f32 %v131_v13, %v110_v14  ;;  %v142_v18 = vpop.f32.mrb[3].mxu0 }
  0xe4   :  { %v119_v19 = vmax.f32 %v118_v17, 0.0 }
  0xe6   :  { %120 = vst.msk [vmem:[%s214_s6] sm:$0xff] %vm55_vm2, %v119_v19 }

// kernel: deepcnn300_forward.23
= control target key start
LH: loop header
LB: loop body
LE: loop exit
PB: predicated region body
PF: predicated region fallthrough
CT: control target
= control target key end

     0   :  { %v159_v1 = vmov 0.0   ;;  %vm160_vm0 = vmmov 0   ;;  %s214_s0 = inlined_call_operand.vmem [shape: f32[8,32], index: 0, kind: input, shape index: {}]   ;;  %s215_s1 = inlined_call_operand.vmem [shape: f32[1,32], index: 1, kind: input, shape index: {}]   ;;  %s216_s2 = inlined_call_operand.vmem [shape: f32[1,32], index: 2, kind: input, shape index: {}]   ;;  %s217_s3 = inlined_call_operand.vmem [shape: bf16[32,16], index: 3, kind: input, shape index: {}]   ;;  %s218_s4 = inlined_call_operand.hbm [shape: f32[8,16], index: 4, kind: output, shape index: {}]  }
   0x1   :  { %v133_v0 = vld [vmem:[%s217_s3] sm:$0xff]   ;;  %122 = vmatprep.subr.bf16.mxu0 %v159_v1  ;;  %v134_v2 = vld [vmem:[%s217_s3 + $0x8] sm:$0xff]   ;;  %126 = vmatprep.mubr.msk.bf16.mxu0 %vm160_vm0, %v159_v1 }
   0x2   :  { %123 = vmatpush3.bf16.msra.mxu0 %v133_v0  ;;  %v19_v3 = vld [vmem:[%s214_s0] sm:$0xff] }
   0x3   :  { %v114_v4 = vld [vmem:[%s215_s1] ss:$0 sm:$0xff]  ;;  %124 = vmatprep.subr.bf16.mxu0 %v159_v1 }
   0x4   :  { %v115_v5 = vld [vmem:[%s216_s2] ss:$0 sm:$0xff]  ;;  %v27_v6 = vmul.f32 %v114_v4, %v19_v3 }
   0x5   :  { %9 = vsyncpa [#allocation3], 0  ;;  %vm54_vm1 = vcmask 261120   ;;  %s161_s3 = smov [#allocation2]   ;;  %vm98_vm2 = vcmask 130048  }
   0x6   :  { %v35_v7 = vadd.f32 %v115_v5, %v27_v6  ;;  %125 = vmatpush3.bf16.msra.mxu0 %v134_v2  ;;  %s106_s25 = sshll.u32 %s161_s3, 4  ;;  %s107_s25 = int_to_ptr.vmem [resolvable:$true] %s106_s25 }
   0x7   :  { %s135_s0 = scalar_lea.vmem %s107_s25, 128  ;;  %p140_p1 = scmp.lt.s32.totalorder %s107_s25, %s107_s25 }
   0x8   :  { %v36_v8 = vmax.f32 %v35_v7, 0.0  ;;  %p136_p0 = scmp.ne.s32.totalorder %s107_s25, %s135_s0  ;;  %p141_p2 = scmp.lt.s32.totalorder %s135_s0, %s135_s0 }
   0xa   :  { %v37_v9 = vpack.c.bf16 %v36_v8, %v36_v8  ;;  %p142_p3 = por %p141_p2, %p140_p1 }
   0xc   :  { %127 = vmatmul.mubr.msk.bf16.vlgmr.msra.gmra.mrb[0].mxu0 %vm54_vm1, %v37_v9  ;;  %p143_p4 = pnand %p142_p3, %p136_p0 }
  0xdf   :  { %v92_v10 = vpop.f32.mrb[0].mxu0 }
  0xe0   :  { %99 = vst.msk [vmem:[#allocation2] sm:$0xff] %vm98_vm2, %v92_v10  ;;  %v128_v11 = vpop.f32.mrb[1].mxu0 }
  0xe1   :  { %v95_v12 = vpop.f32.mrb[2].mxu0 }
  0xe2   :  { %146 = shalt.err (!%p143_p4)
}
  0xe3   :  { %s147_s26 = scalar_lea.hbm %s218_s4, 128 }
  0xe4   :  { %p148_p5 = scmp.ne.s32.totalorder %s218_s4, %s147_s26  ;;  %p151_p6 = scmp.lt.u32.totalorder %s147_s26, %s218_s4 }
  0xe6   :  { %p153_p7 = pnand %p151_p6, %p148_p5 }
  0xe8   :  { %156 = shalt.err (!%p153_p7)
}
  0xe9   :  { %109 = dma.vmem_to_hbm [thread:$0]  %s107_s25, 128, %s218_s4, [#allocation3]   ;;  %v129_v13 = vpop.f32.mrb[3].mxu0 }
  0xea   :  { %157 = dma.done.wait [#allocation3], 128  }
  0xeb   :  { %158 = vsyncadd [#allocation3], 4294967168 }
  0xec   :  { %113 = vsyncpa [#allocation3], 1 }

// kernel: deepcnn300_forward.20
= control target key start
LH: loop header
LB: loop body
LE: loop exit
PB: predicated region body
PF: predicated region fallthrough
CT: control target
= control target key end

     0   :  { %s1057_s9 = smov 0   ;;  %s1203_s0 = inlined_call_operand.vmem [shape: bf16[2,20,24], index: 0, kind: input, shape index: {}]   ;;  %s1204_s1 = inlined_call_operand.vmem [shape: bf16[9,24,8], index: 1, kind: input, shape index: {}]   ;;  %s1205_s2 = inlined_call_operand.vmem [shape: f32[2,8,8], index: 2, kind: output, shape index: {}]  }
   0x1 LB: > { %s801_s10 = sadd.s32 4294967295, %s1038_s9   ;;  %p805_p0 = scmp.ge.s32.totalorder %s1038_s9, 1  ;;  %s1038_s9 = sphi %s1057_s9, %s12_s9  }
   0x2   : > { %p112_p1 = scmp.lt.s32.totalorder %s1038_s9, 3 }
   0x4   : > { %p113_p2 = pnand %p805_p0, %p112_p1 }
   0x5   : > { %v1007_v0 = vld [vmem:[%s1204_s1 + $0x30] sm:$0xff] (!%p113_p2)   ;;  %v1040_v1 = vmov (!%p113_p2), 0.0   ;;  %vm177_vm0 = vcmask (!%p113_p2), 1043456   ;;  %v1009_v3 = vld [vmem:[%s1204_s1 + $0x38] ss:$0 sps:$4 sm:$0xff] (!%p113_p2)   ;;  %p133_p3 = scmp.lt.s32.totalorder (!%p113_p2), %s801_s10, 1 }
   0x6   : > { %116 = sbr.rel (%p113_p2) target bundleno = 290 (0x122), region = 28  ;;  %927 = vmatprep.subr.bf16.mxu0 (!%p113_p2), %v1040_v1  ;;  %895 = vmatprep.subr.bf16.mxu1 (!%p113_p2), %v1040_v1  ;;  %v1008_v2 = vld [vmem:[%s1204_s1 + $0xc] sm:$0xff] (!%p113_p2)   ;;  %v1010_v4 = vld [vmem:[%s1204_s1 + $0x14] ss:$0 sps:$4 sm:$0xff] (!%p113_p2)   ;;  %v438_v5 = vsel (!%p113_p2), %vm177_vm0, %v1009_v3, 0  ;;  %vm1041_vm1 = vmmov (!%p113_p2), 0  }
   0x7   : > { %928 = vmatpush3.bf16.msra.mxu0 (!%p113_p2), %v1007_v0  ;;  %896 = vmatpush3.bf16.msra.mxu1 (!%p113_p2), %v1008_v2  ;;  %v179_v6 = vsel (!%p113_p2), %vm177_vm0, %v1010_v4, 0  ;;  %vm173_vm2 = vcmask (!%p113_p2), 195584   ;;  %v1014_v18 = vld [vmem:[%s1204_s1] sm:$0xff] (!%p113_p2)   ;;  %v1016_v23 = vld [vmem:[%s1204_s1 + $0x8] ss:$0 sps:$4 sm:$0xff] (!%p113_p2)   ;;  %v1019_v31 = vld [vmem:[%s1204_s1 + $0x18] sm:$0xff] (!%p113_p2)  }
   0x8   : > { %929 = vmatprep.subr.bf16.mxu0 (!%p113_p2), %v1040_v1  ;;  %897 = vmatprep.subr.bf16.mxu1 (!%p113_p2), %v1040_v1  ;;  %v1013_v22 = vld [vmem:[%s1204_s1 + $0x3c] sm:$0xff] (!%p113_p2)   ;;  %v1015_v25 = vld [vmem:[%s1204_s1 + $0x44] ss:$0 sps:$4 sm:$0xff] (!%p113_p2)   ;;  %v234_v26 = vsel (!%p113_p2), %vm177_vm0, %v1016_v23, 0  ;;  %v1018_v32 = vld [vmem:[%s1204_s1 + $0x48] sm:$0xff] (!%p113_p2)   ;;  %vm746_vm3 = vcmask (!%p113_p2), 64512  }
   0x9   : > { %899 = vmatprep.mubr.msk.bf16.mxu1 (!%p113_p2), %vm1041_vm1, %v1040_v1  ;;  %931 = vmatprep.mubr.msk.bf16.mxu0 (!%p113_p2), %vm1041_vm1, %v1040_v1  ;;  %v503_v28 = vsel (!%p113_p2), %vm177_vm0, %v1015_v25, 0  ;;  %v1021_v33 = vld [vmem:[%s1204_s1 + $0x20] ss:$0 sps:$4 sm:$0xff] (!%p113_p2)   ;;  %v1020_v34 = vld [vmem:[%s1204_s1 + $0x50] ss:$0 sps:$4 sm:$0xff] (!%p113_p2)   ;;  %v1024_v42 = vld [vmem:[%s1204_s1 + $0x24] sm:$0xff] (!%p113_p2)  }
   0xa   : > { %v298_v36 = vsel (!%p113_p2), %vm177_vm0, %v1021_v33, 0  ;;  %v564_v37 = vsel (!%p113_p2), %vm177_vm0, %v1020_v34, 0  ;;  %v1023_v45 = vld [vmem:[%s1204_s1 + $0x54] sm:$0xff] (!%p113_p2)   ;;  %v1026_v46 = vld [vmem:[%s1204_s1 + $0x2c] ss:$0 sps:$4 sm:$0xff] (!%p113_p2)   ;;  %v1029_v57 = vld [vmem:[%s1204_s1 + $0x60] sm:$0xff] (!%p113_p2)  }
   0xb   : > { %930 = vmatpush3.bf16.msra.mxu0 (!%p113_p2), %v438_v5  ;;  %898 = vmatpush3.bf16.msra.mxu1 (!%p113_p2), %v179_v6  ;;  %v1025_v47 = vld [vmem:[%s1204_s1 + $0x5c] ss:$0 sps:$4 sm:$0xff] (!%p113_p2)   ;;  %v366_v50 = vsel (!%p113_p2), %vm177_vm0, %v1026_v46, 0  ;;  %v1030_v58 = vld [vmem:[%s1204_s1 + $0x68] ss:$0 sps:$4 sm:$0xff] (!%p113_p2)  }
   0xc   : > { %935 = vmatprep.subr.bf16.mxu0 (!%p113_p2), %v1040_v1  ;;  %903 = vmatprep.subr.bf16.mxu1 (!%p113_p2), %v1040_v1  ;;  %v638_v51 = vsel (!%p113_p2), %vm177_vm0, %v1025_v47, 0  ;;  %v703_v60 = vsel (!%p113_p2), %vm177_vm0, %v1030_v58, 0 }
   0xd   : > { %s1207_s10 = smov (!%p133_p3, %s801_s10), 1 }
   0xe   : > { %s996_s19 = smul.u32 12, %s1207_s10  ;;  %s807_s26 = sshll.u32 %s1207_s10, 3 }
   0xf   : > { %s141_s29 = scalar_lea.vmem %s1205_s2, %s807_s26 }
  0x10   : > { %s1095_s22 = scalar_lea.vmem %s1203_s0, %s996_s19 }
  0x11   : > { %v143_v7 = vld [vmem:[%s1095_s22] sm:$0xf]  ;;  %v147_v8 = vld [vmem:[%s1095_s22 + $0x4] sm:$0x1]  ;;  %v608_v40 = vld [vmem:[%s1095_s22 + $0x8] sm:$0x1] }
  0x12   : > { %v1100_v9 = vld [vmem:[%s1095_s22] sm:$0xc]  ;;  %v811_v10 = vcombine.low %v143_v7, %v147_v8  ;;  %v409_v11 = vld [vmem:[%s1095_s22 + $0x4] sm:$0x7] }
  0x13   : > { %v835_v12 = vcombine.low %v1100_v9, %v409_v11  ;;  %v481_v27 = vld [vmem:[%s1095_s22] sm:$0x8]  ;;  %v607_v39 = vld [vmem:[%s1095_s22 + $0x4] sm:$0xf] }
  0x14   : > { %v158_v13 = vshrl.u32 %v811_v10, 16  ;;  %v160_v14 = vshll.u32 %v811_v10, 16  ;;  %v842_v29 = vcombine.low %v481_v27, %v409_v11  ;;  %v276_v35 = vld [vmem:[%s1095_s22] sm:$0xe]  ;;  %v855_v43 = vcombine.low %v607_v39, %v608_v40  ;;  %v546_v44 = vld [vmem:[%s1095_s22 + $0x4] sm:$0xf] }
  0x15   : > { %v418_v15 = vshrl.u32 %v835_v12, 16  ;;  %v421_v16 = vshll.u32 %v835_v12, 16  ;;  %v821_v38 = vcombine.low %v276_v35, %v147_v8  ;;  %v342_v48 = vld [vmem:[%s1095_s22 + $0x4] sm:$0x3] }
  0x16   : > { %v162_v17 = vrot.slane %v160_v14, 1  ;;  %v489_v30 = vrot.slane %v842_v29, 3  ;;  %v621_v49 = vshll.u32 %v855_v43, 16  ;;  %v828_v52 = vcombine.low %v1100_v9, %v342_v48  ;;  %v681_v59 = vld [vmem:[%s1095_s22 + $0x4] sm:$0xe] }
  0x17   : > { %v420_v19 = vrot.slane %v418_v15, 2  ;;  %v423_v20 = vrot.slane %v421_v16, 3  ;;  %v284_v41 = vrot.slane %v821_v38, 1  ;;  %v619_v53 = vshrl.u32 %v855_v43, 16 }
  0x18   : > { %v163_v21 = vor.u32 %v162_v17, %v158_v13  ;;  %v623_v54 = vrot.slane %v621_v49, 1  ;;  %v352_v55 = vrot.slane %v828_v52, 2  ;;  %v862_v61 = vcombine.low %v681_v59, %v608_v40 }
  0x19   : > { %v424_v24 = vor.u32 %v423_v20, %v420_v19 }
  0x1a   : > { %900 = vmatmul.mubr.msk.bf16.vlgmr.msra.gmra.mrb[0].mxu1 %vm173_vm2, %v163_v21  ;;  %v624_v56 = vor.u32 %v623_v54, %v619_v53  ;;  %v689_v62 = vrot.slane %v862_v61, 1 }
  0x1b   : > { %932 = vmatmul.mubr.msk.bf16.vlgmr.msra.gmra.mrb[0].mxu0 %vm173_vm2, %v424_v24  ;;  %904 = vmatpush3.bf16.msra.mxu1 %v1014_v18 }
  0x1c   : > { %936 = vmatpush3.bf16.msra.mxu0 %v1013_v22  ;;  %905 = vmatprep.subr.bf16.mxu1 %v1040_v1 }
  0x1d   : > { %937 = vmatprep.subr.bf16.mxu0 %v1040_v1  ;;  %907 = vmatprep.mubr.msk.bf16.mxu1 %vm1041_vm1, %v1040_v1 }
  0x1e   : > { %939 = vmatprep.mubr.msk.bf16.mxu0 %vm1041_vm1, %v1040_v1 }
  0x1f   : > { %906 = vmatpush3.bf16.msra.mxu1 %v234_v26 }
  0x20   : > { %938 = vmatpush3.bf16.msra.mxu0 %v503_v28  ;;  %911 = vmatprep.subr.bf16.mxu1 %v1040_v1 }
  0x21   : > { %943 = vmatprep.subr.bf16.mxu0 %v1040_v1 }
  0x26   : > { %908 = vmatmul.mubr.msk.bf16.vlgmr.msra.gmra.mrb[0].mxu1 %vm173_vm2, %v143_v7 }
  0x27   : > { %940 = vmatmul.mubr.msk.bf16.vlgmr.msra.gmra.mrb[0].mxu0 %vm173_vm2, %v489_v30  ;;  %912 = vmatpush3.bf16.msra.mxu1 %v1019_v31 }
  0x28   : > { %944 = vmatpush3.bf16.msra.mxu0 %v1018_v32  ;;  %913 = vmatprep.subr.bf16.mxu1 %v1040_v1 }
  0x29   : > { %945 = vmatprep.subr.bf16.mxu0 %v1040_v1  ;;  %915 = vmatprep.mubr.msk.bf16.mxu1 %vm1041_vm1, %v1040_v1 }
  0x2a   : > { %947 = vmatprep.mubr.msk.bf16.mxu0 %vm1041_vm1, %v1040_v1 }
  0x2b   : > { %914 = vmatpush3.bf16.msra.mxu1 %v298_v36 }
  0x2c   : > { %946 = vmatpush3.bf16.msra.mxu0 %v564_v37  ;;  %919 = vmatprep.subr.bf16.mxu1 %v1040_v1 }
  0x2d   : > { %951 = vmatprep.subr.bf16.mxu0 %v1040_v1 }
  0x32   : > { %916 = vmatmul.mubr.msk.bf16.vlgmr.msra.gmra.mrb[0].mxu1 %vm173_vm2, %v284_v41 }
  0x33   : > { %948 = vmatmul.mubr.msk.bf16.vlgmr.msra.gmra.mrb[0].mxu0 %vm173_vm2, %v546_v44  ;;  %920 = vmatpush3.bf16.msra.mxu1 %v1024_v42 }
  0x34   : > { %952 = vmatpush3.bf16.msra.mxu0 %v1023_v45  ;;  %921 = vmatprep.subr.bf16.mxu1 %v1040_v1 }
  0x35   : > { %953 = vmatprep.subr.bf16.mxu0 %v1040_v1  ;;  %923 = vmatprep.mubr.msk.bf16.mxu1 %vm1041_vm1, %v1040_v1 }
  0x36   : > { %955 = vmatprep.mubr.msk.bf16.mxu0 %vm1041_vm1, %v1040_v1 }
  0x37   : > { %922 = vmatpush3.bf16.msra.mxu1 %v366_v50 }
  0x38   : > { %954 = vmatpush3.bf16.msra.mxu0 %v638_v51 }
  0x39   : > { %959 = vmatprep.subr.bf16.mxu0 %v1040_v1 }
  0x3e   : > { %924 = vmatmul.mubr.msk.bf16.vlgmr.msra.gmra.mrb[0].mxu1 %vm173_vm2, %v352_v55 }
  0x3f   : > { %956 = vmatmul.mubr.msk.bf16.vlgmr.msra.gmra.mrb[0].mxu0 %vm173_vm2, %v624_v56 }
  0x40   : > { %960 = vmatpush3.bf16.msra.mxu0 %v1029_v57  ;;  %963 = vmatprep.mubr.msk.bf16.mxu0 %vm1041_vm1, %v1040_v1 }
  0x41   : > { %961 = vmatprep.subr.bf16.mxu0 %v1040_v1 }
  0x44   : > { %962 = vmatpush3.bf16.msra.mxu0 %v703_v60 }
  0x4b   : > { %964 = vmatmul.mubr.msk.bf16.vlgmr.msra.gmra.mrb[0].mxu0 %vm173_vm2, %v689_v62 }
 0x111   : > { %v402_v63 = vpop.f32.mrb[0].mxu1 }
 0x112   : > { %v925_v0 = vpop.f32.mrb[1].mxu1 }
 0x113   : > { %v405_v2 = vpop.f32.mrb[2].mxu1 }
 0x114   : > { %v926_v3 = vpop.f32.mrb[3].mxu1 }
 0x11e   : > { %v739_v4 = vpop.f32.mrb[0].mxu0 }
 0x11f   : > { %v967_v5 = vadd.f32 %v739_v4, %v402_v63  ;;  %v965_v1 = vpop.f32.mrb[1].mxu0 }
 0x120   : > { %v742_v6 = vpop.f32.mrb[2].mxu0 }
 0x121   : > { %747 = vst.msk [vmem:[%s141_s29] sm:$0xff] %vm746_vm3, %v967_v5  ;;  %v966_v7 = vpop.f32.mrb[3].mxu0 }
 0x122 PF: > { %s12_s9 = sadd.s32 1, %s1038_s9  }
 0x123   : > { %p9_p4 = scmp.ge.s32.totalorder %s12_s9, 4  }
 0x125   :  { %11 = sbr.rel (!%p9_p4) target bundleno = 1 (0x1), region = 66 }

</bundles_post_ra>
